<compile_context>
chip_gen: v5e
topology: v5e:2x2
jax: 0.10.0
libtpu: 0.0.40
codegen_flags: <defaults>
</compile_context>

<pallas_src>
import functools

import jax
import jax.numpy as jnp
from jax import lax
from jax.experimental import pallas as pl
from jax.experimental.pallas import tpu as pltpu

_EPS = 1e-5


def _round_up(v, m):
    return ((v + m - 1) // m) * m


def _vmem_capacity_bytes():
    """Per-core VMEM capacity; conservative (v7x-sized) fallback."""
    try:
        cap = int(pltpu.get_tpu_info().vmem_capacity_bytes)
        if cap > 0:
            return cap
    except Exception:
        pass
    return 64 * 1024 * 1024


# ---------------------------------------------------------------------------
# Kernel 0: per-batch guidemap 1x1 conv (Cx -> 1) + separable bilinear
# upsample + fused guide sum / sum-of-squares (for BN1 stats).
# Gridded over B ("parallel"), so x never has to fit whole in VMEM.
# ---------------------------------------------------------------------------
def _guide_kernel(x_ref, wg_ref, bg_ref, r_ref, ct_ref, gf_ref, sg_ref):
    x = x_ref[...]                                   # (Hx, Wx, Cx)
    wg = wg_ref[...]                                 # (1, Cx)
    g = jnp.sum(x * wg, axis=-1) + bg_ref[0, 0]      # (Hx, Wx), Cout=1: off MXU
    tmp = jnp.dot(g, ct_ref[...], preferred_element_type=jnp.float32)   # (Hx, Wy)
    res = jnp.dot(r_ref[...], tmp, preferred_element_type=jnp.float32)  # (Hy, Wy)
    gf_ref[0] = res
    sg_ref[:, 0:1] = jnp.sum(res, keepdims=True)
    sg_ref[:, 1:2] = jnp.sum(res * res, keepdims=True)


# ---------------------------------------------------------------------------
# Kernel 1 (pass 1): per-batch sum / sum-of-squares of y (BN1 statistics).
# Mask is applied only on the (possibly ragged) last tile.
# ---------------------------------------------------------------------------
def _stats_y_kernel(y_ref, sy_ref, *, tile, hw, n_tiles):
    t = pl.program_id(1)

    @pl.when(t == 0)
    def _init():
        sy_ref[...] = jnp.zeros_like(sy_ref)

    y = y_ref[...]                                   # (Cy, tile)

    def _accum(v):
        sy_ref[:, 0:1] += jnp.sum(v, axis=1, keepdims=True)
        sy_ref[:, 1:2] += jnp.sum(v * v, axis=1, keepdims=True)

    if hw % tile == 0:                               # static: no mask needed
        _accum(y)
    else:
        valid = hw - (n_tiles - 1) * tile            # static int

        @pl.when(t < n_tiles - 1)
        def _full_tile():
            _accum(y)

        @pl.when(t == n_tiles - 1)
        def _last_tile():
            col = lax.broadcasted_iota(jnp.int32, y.shape, 1)
            _accum(jnp.where(col < valid, y, 0.0))


# ---------------------------------------------------------------------------
# Kernel 2 (pass 2): BN1 (folded into per-channel scale/shift), first gate
# conv (MXU) + ReLU, second gate conv (Cout=1 -> VPU sublane reduction).
# Writes the pre-BN2 activation `a` (bf16) and its per-batch sum / sumsq.
# ---------------------------------------------------------------------------
def _gate_kernel(y_ref, g_ref, sy_ref, sg_ref, p2_ref, a_ref, sa_ref,
                 *, cy, tile, hw, n_tiles, batch):
    t = pl.program_id(1)

    @pl.when(t == 0)
    def _init():
        sa_ref[...] = jnp.zeros_like(sa_ref)

    c1 = cy + 1
    inv_m = 1.0 / float(batch * hw)

    # Combine per-batch stat partials (tiny) into global BN1 statistics.
    s_y = jnp.sum(sy_ref[...], axis=0)               # (Cy, 2)
    s_g = jnp.sum(sg_ref[...], axis=0)               # (1, 2)

    p2 = p2_ref[...]                                 # (c1, c1+5) = [W1|g1|be1|b1|w2|b2]
    w1 = p2[:, 0:c1]
    g1 = p2[:, c1:c1 + 1]
    be1 = p2[:, c1 + 1:c1 + 2]
    b1 = p2[:, c1 + 2:c1 + 3]
    w2 = p2[:, c1 + 3:c1 + 4]
    b2 = p2[0:1, c1 + 4:c1 + 5]

    mu_y = s_y[:, 0:1] * inv_m
    var_y = s_y[:, 1:2] * inv_m - mu_y * mu_y        # biased var (training BN)
    mu_g = s_g[:, 0:1] * inv_m
    var_g = s_g[:, 1:2] * inv_m - mu_g * mu_g

    scale_y = g1[0:cy] * lax.rsqrt(var_y + _EPS)     # rsqrt on the EUP
    shift_y = be1[0:cy] - mu_y * scale_y
    scale_g = g1[cy:c1] * lax.rsqrt(var_g + _EPS)
    shift_g = be1[cy:c1] - mu_g * scale_g

    y = y_ref[...]                                   # (Cy, tile)
    g = g_ref[...]                                   # (1,  tile)
    ybn = y * scale_y + shift_y
    gbn = g * scale_g + shift_g

    # conv1 (1x1): W1 @ concat([ybn, gbn]) + b1, with the concat folded away.
    h = (jnp.dot(w1[:, 0:cy], ybn, preferred_element_type=jnp.float32)
         + w1[:, cy:c1] * gbn + b1)                  # (c1, tile)
    h = jnp.maximum(h, 0.0)

    # conv2 (1x1, Cout=1): VPU broadcast-mult + small sublane reduction.
    a = jnp.sum(w2 * h, axis=0, keepdims=True) + b2  # (1, tile), f32
    a_ref[...] = a.astype(a_ref.dtype)

    def _accum(v):
        sa_ref[:, 0:1] += jnp.sum(v, axis=1, keepdims=True)
        sa_ref[:, 1:2] += jnp.sum(v * v, axis=1, keepdims=True)

    if hw % tile == 0:
        _accum(a)
    else:
        valid = hw - (n_tiles - 1) * tile

        @pl.when(t < n_tiles - 1)
        def _full_tile():
            _accum(a)

        @pl.when(t == n_tiles - 1)
        def _last_tile():
            col = lax.broadcasted_iota(jnp.int32, a.shape, 1)
            _accum(jnp.where(col < valid, a, 0.0))


# ---------------------------------------------------------------------------
# Kernel 3 (pass 3): BN2 + sigmoid attention, gated combination and the final
# 1x1 conv.  No cross-tile state -> both grid axes are "parallel".
# ---------------------------------------------------------------------------
def _final_kernel(y_ref, a_ref, sa_ref, p3_ref, p3b_ref, o_ref, *, cy, hw, batch):
    inv_m = 1.0 / float(batch * hw)
    s_a = jnp.sum(sa_ref[...], axis=0)               # (1, 2)
    mu = s_a[0:1, 0:1] * inv_m
    var = s_a[0:1, 1:2] * inv_m - mu * mu

    p3 = p3_ref[...]                                 # (Cy, Cy+1) = [Wf | bf]
    wf = p3[:, 0:cy]
    bf = p3[:, cy:cy + 1]
    p3b = p3b_ref[...]                               # (1, 2) = [g2, be2]
    g2 = p3b[0:1, 0:1]
    be2 = p3b[0:1, 1:2]

    a = a_ref[...].astype(jnp.float32)               # (1, tile)
    an = (a - mu) * (g2 * lax.rsqrt(var + _EPS)) + be2
    att = jax.nn.sigmoid(an)                         # sigmoid on the EUP
    z = y_ref[...] * (att + 1.0)                     # (Cy, tile)
    o_ref[...] = jnp.dot(wf, z, preferred_element_type=jnp.float32) + bf


# ---------------------------------------------------------------------------
# Host-side helpers
# ---------------------------------------------------------------------------
def _bilinear_matrix(out_size, in_size):
    """PyTorch bilinear (align_corners=False) 1-D interpolation matrix (out, in)."""
    scale = in_size / out_size
    i = jnp.arange(out_size, dtype=jnp.float32)
    src = jnp.maximum((i + 0.5) * scale - 0.5, 0.0)  # PyTorch clamps negatives
    p0 = jnp.floor(src)
    w_hi = src - p0
    w_lo = 1.0 - w_hi
    p0i = p0.astype(jnp.int32)
    p1i = jnp.minimum(p0i + 1, in_size - 1)
    return (w_lo[:, None] * jax.nn.one_hot(p0i, in_size, dtype=jnp.float32)
            + w_hi[:, None] * jax.nn.one_hot(p1i, in_size, dtype=jnp.float32))


def init_params(key, x_channel, y_channel):
    """Deterministic init matching Guide_flow.__init__ parameter shapes
    (conv weights stored (Cout, Cin); biases stored as columns)."""
    c = y_channel
    ks = jax.random.split(key, 8)

    def rnd(k, shape, fan_in):
        return jax.random.normal(k, shape, jnp.float32) / jnp.sqrt(float(fan_in))

    return {
        # guidemap: Conv2d(x_channel, 1, 1)
        "wg": rnd(ks[0], (1, x_channel), x_channel),
        "bg": rnd(ks[1], (1, 1), x_channel),
        # BatchNorm2d(c+1): default weight=1, bias=0
        "g1": jnp.ones((c + 1, 1), jnp.float32),
        "be1": jnp.zeros((c + 1, 1), jnp.float32),
        # Conv2d(c+1, c+1, 1)
        "w1": rnd(ks[2], (c + 1, c + 1), c + 1),
        "b1": rnd(ks[3], (c + 1, 1), c + 1),
        # Conv2d(c+1, 1, 1)
        "w2": rnd(ks[4], (c + 1, 1), c + 1),
        "b2": rnd(ks[5], (1, 1), c + 1),
        # BatchNorm2d(1)
        "g2": jnp.ones((1, 1), jnp.float32),
        "be2": jnp.zeros((1, 1), jnp.float32),
        # final Conv2d(c, c, 1)
        "wf": rnd(ks[6], (c, c), c),
        "bf": rnd(ks[7], (c, 1), c),
    }


def guide_flow_forward(x_nchw, y_nchw, params, *, tile_hint=None,
                       a_dtype=jnp.bfloat16):
    B, Cx, Hx, Wx = x_nchw.shape
    By, Cy, Hy, Wy = y_nchw.shape
    assert By == B
    c1 = Cy + 1
    HW = Hy * Wy

    # ---- VMEM budget -> pixel tile (generation-aware) ----------------------
    vmem_cap = _vmem_capacity_bytes()                       # 64 MiB on v7x, 128 MiB on v5e/v6e
    vmem_limit = min(vmem_cap * 3 // 4, 96 * 1024 * 1024)   # 48 / 96 MiB
    # Heaviest streaming pass moves ~ (2*Cy + 3) f32 values per pixel,
    # double-buffered; keep it at ~1/3 of the scoped limit (headroom for
    # compiler temporaries / spills).
    per_px = (2 * Cy + 3) * 4 * 2
    tile = (vmem_limit // 3) // per_px
    if tile_hint is not None:
        tile = int(tile_hint)
    tile = min(tile, 64 * 1024, _round_up(HW, 128))
    tile = max(128, (tile // 128) * 128)
    n_tiles = pl.cdiv(HW, tile)

    # ---- layout: cheap reshapes only, no transposes of y / output ----------
    y_flat = y_nchw.reshape(B, Cy, HW)                      # contiguous reshape
    x_nhwc = jnp.transpose(x_nchw, (0, 2, 3, 1))            # tiny low-res input

    # 1-D bilinear operators (shape-only constants).
    r_mat = _bilinear_matrix(Hy, Hx)                        # (Hy, Hx)
    ct_mat = _bilinear_matrix(Wy, Wx).T                     # (Wx, Wy)

    # ---- pack the tiny parameters into small VMEM slabs ---------------------
    p2 = jnp.concatenate(
        [params["w1"], params["g1"], params["be1"], params["b1"],
         params["w2"], jnp.broadcast_to(params["b2"], (c1, 1))], axis=1)   # (c1, c1+5)
    p3 = jnp.concatenate([params["wf"], params["bf"]], axis=1)             # (Cy, Cy+1)
    p3b = jnp.concatenate([params["g2"], params["be2"]], axis=1)           # (1, 2)

    def _const(shape):
        nd = len(shape)
        return pl.BlockSpec(shape, lambda *_: (0,) * nd)    # resident small block

    cp_guide = pltpu.CompilerParams(dimension_semantics=("parallel",),
                                    vmem_limit_bytes=vmem_limit)
    cp_accum = pltpu.CompilerParams(dimension_semantics=("parallel", "arbitrary"),
                                    vmem_limit_bytes=vmem_limit)
    cp_final = pltpu.CompilerParams(dimension_semantics=("parallel", "parallel"),
                                    vmem_limit_bytes=vmem_limit)

    # ---- call 0: guide conv + separable bilinear upsample + guide stats -----
    gf4, sg = pl.pallas_call(
        _guide_kernel,
        grid=(B,),
        in_specs=[pl.BlockSpec((None, Hx, Wx, Cx), lambda b: (b, 0, 0, 0)),
                  _const((1, Cx)), _const((1, 1)),
                  _const((Hy, Hx)), _const((Wx, Wy))],
        out_specs=[pl.BlockSpec((None, 1, Hy, Wy), lambda b: (b, 0, 0, 0)),
                   pl.BlockSpec((None, 1, 2), lambda b: (b, 0, 0))],
        out_shape=(jax.ShapeDtypeStruct((B, 1, Hy, Wy), jnp.float32),
                   jax.ShapeDtypeStruct((B, 1, 2), jnp.float32)),
        compiler_params=cp_guide,
    )(x_nhwc, params["wg"], params["bg"], r_mat, ct_mat)
    # May materialize a small (M*4 B) relayout; the only remaining layout op
    # touching a full-resolution tensor.
    gf = gf4.reshape(B, 1, HW)

    y_spec = pl.BlockSpec((None, Cy, tile), lambda b, t: (b, 0, t))
    v_spec = pl.BlockSpec((None, 1, tile), lambda b, t: (b, 0, t))

    # ---- call 1: per-batch BN1 stats of y (guide stats already done) --------
    sy = pl.pallas_call(
        functools.partial(_stats_y_kernel, tile=tile, hw=HW, n_tiles=n_tiles),
        grid=(B, n_tiles),
        in_specs=[y_spec],
        out_specs=pl.BlockSpec((None, Cy, 2), lambda b, t: (b, 0, 0)),
        out_shape=jax.ShapeDtypeStruct((B, Cy, 2), jnp.float32),
        compiler_params=cp_accum,
    )(y_flat)

    # ---- call 2: BN1 + gate convs -> `a` (bf16) and its per-batch stats -----
    a_arr, sa = pl.pallas_call(
        functools.partial(_gate_kernel, cy=Cy, tile=tile, hw=HW,
                          n_tiles=n_tiles, batch=B),
        grid=(B, n_tiles),
        in_specs=[y_spec, v_spec, _const((B, Cy, 2)), _const((B, 1, 2)),
                  _const((c1, c1 + 5))],
        out_specs=[pl.BlockSpec((None, 1, tile), lambda b, t: (b, 0, t)),
                   pl.BlockSpec((None, 1, 2), lambda b, t: (b, 0, 0))],
        out_shape=(jax.ShapeDtypeStruct((B, 1, HW), a_dtype),
                   jax.ShapeDtypeStruct((B, 1, 2), jnp.float32)),
        compiler_params=cp_accum,
    )(y_flat, gf, sy, sg, p2)

    # ---- call 3: BN2 + sigmoid gate + final 1x1 conv (fully parallel) -------
    out_flat = pl.pallas_call(
        functools.partial(_final_kernel, cy=Cy, hw=HW, batch=B),
        grid=(B, n_tiles),
        in_specs=[y_spec, v_spec, _const((B, 1, 2)), _const((Cy, Cy + 1)),
                  _const((1, 2))],
        out_specs=pl.BlockSpec((None, Cy, tile), lambda b, t: (b, 0, t)),
        out_shape=jax.ShapeDtypeStruct((B, Cy, HW), jnp.float32),
        compiler_params=cp_final,
    )(y_flat, a_arr, sa, p3, p3b)

    return out_flat.reshape(B, Cy, Hy, Wy)                  # free reshape to NCHW


# ---------------------------------------------------------------------------
# Pure-JAX reference of the same math (for the correctness sanity check)
# ---------------------------------------------------------------------------
def _reference_forward(x, y, params):
    B, Cx, Hx, Wx = x.shape
    _, Cy, Hy, Wy = y.shape
    r_mat = _bilinear_matrix(Hy, Hx)
    c_mat = _bilinear_matrix(Wy, Wx)
    g = jnp.einsum('bchw,c->bhw', x, params["wg"][0]) + params["bg"][0, 0]
    t = jnp.einsum('bij,qj->biq', g, c_mat)
    gf = jnp.einsum('pi,biq->bpq', r_mat, t)[:, None]        # (B, 1, Hy, Wy)
    cat = jnp.concatenate([y, gf], axis=1)
    mu = jnp.mean(cat, axis=(0, 2, 3), keepdims=True)
    var = jnp.mean(cat * cat, axis=(0, 2, 3), keepdims=True) - mu * mu
    g1 = params["g1"].reshape(1, Cy + 1, 1, 1)
    be1 = params["be1"].reshape(1, Cy + 1, 1, 1)
    bn1 = (cat - mu) * lax.rsqrt(var + _EPS) * g1 + be1
    h = (jnp.einsum('oi,bihw->bohw', params["w1"], bn1)
         + params["b1"].reshape(1, Cy + 1, 1, 1))
    h = jnp.maximum(h, 0.0)
    a = jnp.einsum('i,bihw->bhw', params["w2"][:, 0], h)[:, None] + params["b2"][0, 0]
    mu_a = jnp.mean(a)
    var_a = jnp.mean(a * a) - mu_a * mu_a
    an = (a - mu_a) * lax.rsqrt(var_a + _EPS) * params["g2"][0, 0] + params["be2"][0, 0]
    att = jax.nn.sigmoid(an)
    z = y * (att + 1.0)
    return (jnp.einsum('oi,bihw->bohw', params["wf"], z)
            + params["bf"].reshape(1, Cy, 1, 1))


if __name__ == "__main__":
    key = jax.random.PRNGKey(0)
    kx, ky, kp = jax.random.split(key, 3)

    B, Cx = 2, 4
    Cy = 4
    params = init_params(kp, Cx, Cy)

    # Case 1: 128-divisible pixel count, bf16 activation storage, 2 hw-tiles.
    Hx, Wx, Hy, Wy = 8, 8, 16, 16
    x = jax.random.normal(kx, (B, Cx, Hx, Wx), jnp.float32)
    y = jax.random.normal(ky, (B, Cy, Hy, Wy), jnp.float32)
    fwd = jax.jit(functools.partial(guide_flow_forward, tile_hint=128))
    out = jax.block_until_ready(fwd(x, y, params))
    assert out.shape == (B, Cy, Hy, Wy), out.shape
    assert bool(jnp.all(jnp.isfinite(out)))
    ref = _reference_forward(x, y, params)
    assert bool(jnp.allclose(out, ref, rtol=5e-2, atol=5e-2)), \
        float(jnp.max(jnp.abs(out - ref)))

    # Case 2: ragged pixel count (HW = 18*14 = 252), f32 activations,
    # exercising the last-tile masking path.
    Hx2, Wx2, Hy2, Wy2 = 9, 7, 18, 14
    x2 = jax.random.normal(kx, (B, Cx, Hx2, Wx2), jnp.float32)
    y2 = jax.random.normal(ky, (B, Cy, Hy2, Wy2), jnp.float32)
    fwd2 = jax.jit(functools.partial(guide_flow_forward, tile_hint=128,
                                     a_dtype=jnp.float32))
    out2 = jax.block_until_ready(fwd2(x2, y2, params))
    assert out2.shape == (B, Cy, Hy2, Wy2), out2.shape
    assert bool(jnp.all(jnp.isfinite(out2)))
    ref2 = _reference_forward(x2, y2, params)
    assert bool(jnp.allclose(out2, ref2, rtol=2e-2, atol=2e-2)), \
        float(jnp.max(jnp.abs(out2 - ref2)))

    print("KERNEL_OK")
</pallas_src>

<mosaic_0001>
module attributes {stable_mosaic.version = 11 : i64} {
  func.func @_guide_kernel(%arg0: i32, %arg1: memref<1x8x8x4xf32, #tpu.memory_space<vmem>>, %arg2: memref<1x4xf32, #tpu.memory_space<vmem>>, %arg3: memref<1x1xf32, #tpu.memory_space<vmem>>, %arg4: memref<16x8xf32, #tpu.memory_space<vmem>>, %arg5: memref<8x16xf32, #tpu.memory_space<vmem>>, %arg6: memref<1x1x16x16xf32, #tpu.memory_space<vmem>>, %arg7: memref<1x1x2xf32, #tpu.memory_space<vmem>>) attributes {dimension_semantics = [#tpu.dimension_semantics<parallel>], iteration_bounds = array<i64: 2>, scalar_prefetch = 0 : i64, scratch_operands = 0 : i64, tpu.core_type = #tpu.core_type<tc>, window_params = [{transform_indices = @transform_0, window_bounds = array<i64: 1, 8, 8, 4>}, {pipeline_mode = #tpu.pipeline_mode<synchronous>, transform_indices = @transform_1, window_bounds = array<i64: 1, 4>}, {pipeline_mode = #tpu.pipeline_mode<synchronous>, transform_indices = @transform_2, window_bounds = array<i64: 1, 1>}, {pipeline_mode = #tpu.pipeline_mode<synchronous>, transform_indices = @transform_3, window_bounds = array<i64: 16, 8>}, {pipeline_mode = #tpu.pipeline_mode<synchronous>, transform_indices = @transform_4, window_bounds = array<i64: 8, 16>}, {transform_indices = @transform_5, window_bounds = array<i64: 1, 1, 16, 16>}, {transform_indices = @transform_6, window_bounds = array<i64: 1, 1, 2>}]} {
    %c0 = arith.constant 0 : index
    %c0_0 = arith.constant 0 : index
    %c0_1 = arith.constant 0 : index
    %c0_2 = arith.constant 0 : index
    %0 = vector.load %arg1[%c0, %c0_0, %c0_1, %c0_2] : memref<1x8x8x4xf32, #tpu.memory_space<vmem>>, vector<1x8x8x4xf32>
    %1 = vector.shape_cast %0 : vector<1x8x8x4xf32> to vector<8x8x4xf32>
    %c0_3 = arith.constant 0 : index
    %c0_4 = arith.constant 0 : index
    %2 = vector.load %arg2[%c0_3, %c0_4] : memref<1x4xf32, #tpu.memory_space<vmem>>, vector<1x4xf32>
    %3 = vector.shape_cast %2 : vector<1x4xf32> to vector<1x1x4xf32>
    %4 = vector.broadcast %3 : vector<1x1x4xf32> to vector<8x8x4xf32>
    %5 = arith.mulf %1, %4 : vector<8x8x4xf32>
    %cst = arith.constant dense<0.000000e+00> : vector<8x8xf32>
    %6 = vector.multi_reduction <add>, %5, %cst [2] : vector<8x8x4xf32> to vector<8x8xf32>
    %c0_5 = arith.constant 0 : index
    %c0_6 = arith.constant 0 : index
    %7 = vector.load %arg3[%c0_5, %c0_6] : memref<1x1xf32, #tpu.memory_space<vmem>>, vector<1x1xf32>
    %8 = vector.extract %7[0, 0] : f32 from vector<1x1xf32>
    %9 = vector.broadcast %8 : f32 to vector<8x8xf32>
    %10 = arith.addf %6, %9 : vector<8x8xf32>
    %c0_7 = arith.constant 0 : index
    %c0_8 = arith.constant 0 : index
    %11 = vector.load %arg5[%c0_7, %c0_8] : memref<8x16xf32, #tpu.memory_space<vmem>>, vector<8x16xf32>
    %cst_9 = arith.constant dense<0.000000e+00> : vector<8x16xf32>
    %12 = tpu.matmul %10, %11, %cst_9 {dimension_numbers = #tpu.dot_dimension_numbers<[1], [0], [0], [1], [0, 0, 1, 1], [], []>} : vector<8x8xf32>, vector<8x16xf32>, vector<8x16xf32> -> vector<8x16xf32>
    %c0_10 = arith.constant 0 : index
    %c0_11 = arith.constant 0 : index
    %13 = vector.load %arg4[%c0_10, %c0_11] : memref<16x8xf32, #tpu.memory_space<vmem>>, vector<16x8xf32>
    %cst_12 = arith.constant dense<0.000000e+00> : vector<16x16xf32>
    %14 = tpu.matmul %13, %12, %cst_12 {dimension_numbers = #tpu.dot_dimension_numbers<[1], [0], [0], [1], [0, 0, 1, 1], [], []>} : vector<16x8xf32>, vector<8x16xf32>, vector<16x16xf32> -> vector<16x16xf32>
    %c0_13 = arith.constant 0 : index
    %c0_14 = arith.constant 0 : index
    %c0_15 = arith.constant 0 : index
    %c0_16 = arith.constant 0 : index
    %15 = vector.load %arg6[%c0_13, %c0_14, %c0_15, %c0_16] : memref<1x1x16x16xf32, #tpu.memory_space<vmem>>, vector<1x1x16x16xf32>
    %16 = vector.shape_cast %15 : vector<1x1x16x16xf32> to vector<16x16xf32>
    %17 = vector.shape_cast %14 : vector<16x16xf32> to vector<1x1x16x16xf32>
    tpu.vector_store %arg6[%c0_13, %c0_14, %c0_15, %c0_16], %17 {strides = array<i32>} : memref<1x1x16x16xf32, #tpu.memory_space<vmem>>, vector<1x1x16x16xf32>,
    %18 = vector.shape_cast %14 : vector<16x16xf32> to vector<1x16x16xf32>
    %cst_17 = arith.constant dense<0.000000e+00> : vector<1xf32>
    %19 = vector.multi_reduction <add>, %18, %cst_17 [1, 2] : vector<1x16x16xf32> to vector<1xf32>
    %20 = vector.shape_cast %19 : vector<1xf32> to vector<1x1x1xf32>
    %21 = vector.extract %20[0, 0, 0] : f32 from vector<1x1x1xf32>
    %22 = vector.broadcast %21 : f32 to vector<1x1xf32>
    %c0_18 = arith.constant 0 : index
    %c0_19 = arith.constant 0 : index
    %c0_20 = arith.constant 0 : index
    %23 = vector.load %arg7[%c0_18, %c0_19, %c0_20] : memref<1x1x2xf32, #tpu.memory_space<vmem>>, vector<1x1x1xf32>
    %24 = vector.shape_cast %23 : vector<1x1x1xf32> to vector<1x1xf32>
    %25 = vector.shape_cast %22 : vector<1x1xf32> to vector<1x1x1xf32>
    tpu.vector_store %arg7[%c0_18, %c0_19, %c0_20], %25 {strides = array<i32>} : memref<1x1x2xf32, #tpu.memory_space<vmem>>, vector<1x1x1xf32>,
    %26 = arith.mulf %14, %14 : vector<16x16xf32>
    %27 = vector.shape_cast %26 : vector<16x16xf32> to vector<1x16x16xf32>
    %cst_21 = arith.constant dense<0.000000e+00> : vector<1xf32>
    %28 = vector.multi_reduction <add>, %27, %cst_21 [1, 2] : vector<1x16x16xf32> to vector<1xf32>
    %29 = vector.shape_cast %28 : vector<1xf32> to vector<1x1x1xf32>
    %30 = vector.extract %29[0, 0, 0] : f32 from vector<1x1x1xf32>
    %31 = vector.broadcast %30 : f32 to vector<1x1xf32>
    %c0_22 = arith.constant 0 : index
    %c0_23 = arith.constant 0 : index
    %c1 = arith.constant 1 : index
    %32 = vector.load %arg7[%c0_22, %c0_23, %c1] : memref<1x1x2xf32, #tpu.memory_space<vmem>>, vector<1x1x1xf32>
    %33 = vector.shape_cast %32 : vector<1x1x1xf32> to vector<1x1xf32>
    %34 = vector.shape_cast %31 : vector<1x1xf32> to vector<1x1x1xf32>
    tpu.vector_store %arg7[%c0_22, %c0_23, %c1], %34 {strides = array<i32>} : memref<1x1x2xf32, #tpu.memory_space<vmem>>, vector<1x1x1xf32>,
    return
  }
  func.func @transform_0(%arg0: i32) -> (i32, i32, i32, i32) {
    %c0_i32 = arith.constant 0 : i32
    %c0_i32_0 = arith.constant 0 : i32
    %c0_i32_1 = arith.constant 0 : i32
    %c0_i32_2 = arith.constant 0 : i32
    return %arg0, %c0_i32, %c0_i32_0, %c0_i32_1 : i32, i32, i32, i32
  }
  func.func @transform_1(%arg0: i32) -> (i32, i32) {
    %c0_i32 = arith.constant 0 : i32
    %c0_i32_0 = arith.constant 0 : i32
    %c0_i32_1 = arith.constant 0 : i32
    return %c0_i32, %c0_i32_0 : i32, i32
  }
  func.func @transform_2(%arg0: i32) -> (i32, i32) {
    %c0_i32 = arith.constant 0 : i32
    %c0_i32_0 = arith.constant 0 : i32
    %c0_i32_1 = arith.constant 0 : i32
    return %c0_i32, %c0_i32_0 : i32, i32
  }
  func.func @transform_3(%arg0: i32) -> (i32, i32) {
    %c0_i32 = arith.constant 0 : i32
    %c0_i32_0 = arith.constant 0 : i32
    %c0_i32_1 = arith.constant 0 : i32
    return %c0_i32, %c0_i32_0 : i32, i32
  }
  func.func @transform_4(%arg0: i32) -> (i32, i32) {
    %c0_i32 = arith.constant 0 : i32
    %c0_i32_0 = arith.constant 0 : i32
    %c0_i32_1 = arith.constant 0 : i32
    return %c0_i32, %c0_i32_0 : i32, i32
  }
  func.func @transform_5(%arg0: i32) -> (i32, i32, i32, i32) {
    %c0_i32 = arith.constant 0 : i32
    %c0_i32_0 = arith.constant 0 : i32
    %c0_i32_1 = arith.constant 0 : i32
    %c0_i32_2 = arith.constant 0 : i32
    return %arg0, %c0_i32, %c0_i32_0, %c0_i32_1 : i32, i32, i32, i32
  }
  func.func @transform_6(%arg0: i32) -> (i32, i32, i32) {
    %c0_i32 = arith.constant 0 : i32
    %c0_i32_0 = arith.constant 0 : i32
    %c0_i32_1 = arith.constant 0 : i32
    return %arg0, %c0_i32, %c0_i32_0 : i32, i32, i32
  }
}

module attributes {stable_mosaic.version = 11 : i64} {
  func.func @_stats_y_kernel(%arg0: i32, %arg1: i32, %arg2: memref<1x4x128xf32, #tpu.memory_space<vmem>>, %arg3: memref<1x4x2xf32, #tpu.memory_space<vmem>>) attributes {dimension_semantics = [#tpu.dimension_semantics<parallel>, #tpu.dimension_semantics<arbitrary>], iteration_bounds = array<i64: 2, 2>, scalar_prefetch = 0 : i64, scratch_operands = 0 : i64, tpu.core_type = #tpu.core_type<tc>, window_params = [{transform_indices = @transform_0, window_bounds = array<i64: 1, 4, 128>}, {transform_indices = @transform_1, window_bounds = array<i64: 1, 4, 2>}]} {
    %c0_i32 = arith.constant 0 : i32
    %0 = arith.cmpi eq, %arg1, %c0_i32 : i32
    %1 = arith.extui %0 : i1 to i32
    %c0_i32_0 = arith.constant 0 : i32
    %2 = arith.cmpi ne, %1, %c0_i32_0 : i32
    scf.if %2 {
      %cst_15 = arith.constant 0.000000e+00 : f32
      %22 = vector.broadcast %cst_15 : f32 to vector<4x2xf32>
      %c0_16 = arith.constant 0 : index
      %c0_17 = arith.constant 0 : index
      %c0_18 = arith.constant 0 : index
      %23 = vector.load %arg3[%c0_16, %c0_17, %c0_18] : memref<1x4x2xf32, #tpu.memory_space<vmem>>, vector<1x4x2xf32>
      %24 = vector.shape_cast %23 : vector<1x4x2xf32> to vector<4x2xf32>
      %25 = vector.shape_cast %22 : vector<4x2xf32> to vector<1x4x2xf32>
      tpu.vector_store %arg3[%c0_16, %c0_17, %c0_18], %25 {strides = array<i32>} : memref<1x4x2xf32, #tpu.memory_space<vmem>>, vector<1x4x2xf32>,
    } else {
    }
    %c0 = arith.constant 0 : index
    %c0_1 = arith.constant 0 : index
    %c0_2 = arith.constant 0 : index
    %3 = vector.load %arg2[%c0, %c0_1, %c0_2] : memref<1x4x128xf32, #tpu.memory_space<vmem>>, vector<1x4x128xf32>
    %4 = vector.shape_cast %3 : vector<1x4x128xf32> to vector<4x128xf32>
    %c0_3 = arith.constant 0 : index
    %c0_4 = arith.constant 0 : index
    %c0_5 = arith.constant 0 : index
    %5 = vector.load %arg3[%c0_3, %c0_4, %c0_5] : memref<1x4x2xf32, #tpu.memory_space<vmem>>, vector<1x4x1xf32>
    %6 = vector.shape_cast %5 : vector<1x4x1xf32> to vector<4x1xf32>
    %cst = arith.constant dense<0.000000e+00> : vector<4xf32>
    %7 = vector.multi_reduction <add>, %4, %cst [1] : vector<4x128xf32> to vector<4xf32>
    %8 = vector.shape_cast %7 : vector<4xf32> to vector<4x1xf32>
    %9 = arith.addf %6, %8 : vector<4x1xf32>
    %c0_6 = arith.constant 0 : index
    %c0_7 = arith.constant 0 : index
    %c0_8 = arith.constant 0 : index
    %10 = vector.load %arg3[%c0_6, %c0_7, %c0_8] : memref<1x4x2xf32, #tpu.memory_space<vmem>>, vector<1x4x1xf32>
    %11 = vector.shape_cast %10 : vector<1x4x1xf32> to vector<4x1xf32>
    %12 = vector.shape_cast %9 : vector<4x1xf32> to vector<1x4x1xf32>
    tpu.vector_store %arg3[%c0_6, %c0_7, %c0_8], %12 {strides = array<i32>} : memref<1x4x2xf32, #tpu.memory_space<vmem>>, vector<1x4x1xf32>,
    %c0_9 = arith.constant 0 : index
    %c0_10 = arith.constant 0 : index
    %c1 = arith.constant 1 : index
    %13 = vector.load %arg3[%c0_9, %c0_10, %c1] : memref<1x4x2xf32, #tpu.memory_space<vmem>>, vector<1x4x1xf32>
    %14 = vector.shape_cast %13 : vector<1x4x1xf32> to vector<4x1xf32>
    %15 = arith.mulf %4, %4 : vector<4x128xf32>
    %cst_11 = arith.constant dense<0.000000e+00> : vector<4xf32>
    %16 = vector.multi_reduction <add>, %15, %cst_11 [1] : vector<4x128xf32> to vector<4xf32>
    %17 = vector.shape_cast %16 : vector<4xf32> to vector<4x1xf32>
    %18 = arith.addf %14, %17 : vector<4x1xf32>
    %c0_12 = arith.constant 0 : index
    %c0_13 = arith.constant 0 : index
    %c1_14 = arith.constant 1 : index
    %19 = vector.load %arg3[%c0_12, %c0_13, %c1_14] : memref<1x4x2xf32, #tpu.memory_space<vmem>>, vector<1x4x1xf32>
    %20 = vector.shape_cast %19 : vector<1x4x1xf32> to vector<4x1xf32>
    %21 = vector.shape_cast %18 : vector<4x1xf32> to vector<1x4x1xf32>
    tpu.vector_store %arg3[%c0_12, %c0_13, %c1_14], %21 {strides = array<i32>} : memref<1x4x2xf32, #tpu.memory_space<vmem>>, vector<1x4x1xf32>,
    return
  }
  func.func @transform_0(%arg0: i32, %arg1: i32) -> (i32, i32, i32) {
    %c0_i32 = arith.constant 0 : i32
    %c0_i32_0 = arith.constant 0 : i32
    return %arg0, %c0_i32, %arg1 : i32, i32, i32
  }
  func.func @transform_1(%arg0: i32, %arg1: i32) -> (i32, i32, i32) {
    %c0_i32 = arith.constant 0 : i32
    %c0_i32_0 = arith.constant 0 : i32
    %c0_i32_1 = arith.constant 0 : i32
    return %arg0, %c0_i32, %c0_i32_0 : i32, i32, i32
  }
}

module attributes {stable_mosaic.version = 11 : i64} {
  func.func @_gate_kernel(%arg0: i32, %arg1: i32, %arg2: memref<1x4x128xf32, #tpu.memory_space<vmem>>, %arg3: memref<1x1x128xf32, #tpu.memory_space<vmem>>, %arg4: memref<2x4x2xf32, #tpu.memory_space<vmem>>, %arg5: memref<2x1x2xf32, #tpu.memory_space<vmem>>, %arg6: memref<5x10xf32, #tpu.memory_space<vmem>>, %arg7: memref<1x1x128xbf16, #tpu.memory_space<vmem>>, %arg8: memref<1x1x2xf32, #tpu.memory_space<vmem>>) attributes {dimension_semantics = [#tpu.dimension_semantics<parallel>, #tpu.dimension_semantics<arbitrary>], iteration_bounds = array<i64: 2, 2>, scalar_prefetch = 0 : i64, scratch_operands = 0 : i64, tpu.core_type = #tpu.core_type<tc>, window_params = [{transform_indices = @transform_0, window_bounds = array<i64: 1, 4, 128>}, {transform_indices = @transform_1, window_bounds = array<i64: 1, 1, 128>}, {pipeline_mode = #tpu.pipeline_mode<synchronous>, transform_indices = @transform_2, window_bounds = array<i64: 2, 4, 2>}, {pipeline_mode = #tpu.pipeline_mode<synchronous>, transform_indices = @transform_3, window_bounds = array<i64: 2, 1, 2>}, {pipeline_mode = #tpu.pipeline_mode<synchronous>, transform_indices = @transform_4, window_bounds = array<i64: 5, 10>}, {transform_indices = @transform_5, window_bounds = array<i64: 1, 1, 128>}, {transform_indices = @transform_6, window_bounds = array<i64: 1, 1, 2>}]} {
    %c0_i32 = arith.constant 0 : i32
    %0 = arith.cmpi eq, %arg1, %c0_i32 : i32
    %1 = arith.extui %0 : i1 to i32
    %c0_i32_0 = arith.constant 0 : i32
    %2 = arith.cmpi ne, %1, %c0_i32_0 : i32
    scf.if %2 {
      %cst_40 = arith.constant 0.000000e+00 : f32
      %96 = vector.broadcast %cst_40 : f32 to vector<1x2xf32>
      %c0_41 = arith.constant 0 : index
      %c0_42 = arith.constant 0 : index
      %c0_43 = arith.constant 0 : index
      %97 = vector.load %arg8[%c0_41, %c0_42, %c0_43] : memref<1x1x2xf32, #tpu.memory_space<vmem>>, vector<1x1x2xf32>
      %98 = vector.shape_cast %97 : vector<1x1x2xf32> to vector<1x2xf32>
      %99 = vector.shape_cast %96 : vector<1x2xf32> to vector<1x1x2xf32>
      tpu.vector_store %arg8[%c0_41, %c0_42, %c0_43], %99 {strides = array<i32>} : memref<1x1x2xf32, #tpu.memory_space<vmem>>, vector<1x1x2xf32>,
    } else {
    }
    %c0 = arith.constant 0 : index
    %c0_1 = arith.constant 0 : index
    %c0_2 = arith.constant 0 : index
    %3 = vector.load %arg4[%c0, %c0_1, %c0_2] : memref<2x4x2xf32, #tpu.memory_space<vmem>>, vector<2x4x2xf32>
    %cst = arith.constant dense<0.000000e+00> : vector<4x2xf32>
    %4 = vector.multi_reduction <add>, %3, %cst [0] : vector<2x4x2xf32> to vector<4x2xf32>
    %c0_3 = arith.constant 0 : index
    %c0_4 = arith.constant 0 : index
    %c0_5 = arith.constant 0 : index
    %5 = vector.load %arg5[%c0_3, %c0_4, %c0_5] : memref<2x1x2xf32, #tpu.memory_space<vmem>>, vector<2x1x2xf32>
    %cst_6 = arith.constant dense<0.000000e+00> : vector<1x2xf32>
    %6 = vector.multi_reduction <add>, %5, %cst_6 [0] : vector<2x1x2xf32> to vector<1x2xf32>
    %c0_7 = arith.constant 0 : index
    %c0_8 = arith.constant 0 : index
    %7 = vector.load %arg6[%c0_7, %c0_8] : memref<5x10xf32, #tpu.memory_space<vmem>>, vector<5x10xf32>
    %8 = vector.extract_strided_slice %7 {offsets = [0, 0], sizes = [5, 5], strides = [1, 1]} : vector<5x10xf32> to vector<5x5xf32>
    %9 = vector.extract_strided_slice %7 {offsets = [0, 5], sizes = [5, 1], strides = [1, 1]} : vector<5x10xf32> to vector<5x1xf32>
    %10 = vector.extract_strided_slice %7 {offsets = [0, 6], sizes = [5, 1], strides = [1, 1]} : vector<5x10xf32> to vector<5x1xf32>
    %11 = vector.extract_strided_slice %7 {offsets = [0, 7], sizes = [5, 1], strides = [1, 1]} : vector<5x10xf32> to vector<5x1xf32>
    %12 = vector.extract_strided_slice %7 {offsets = [0, 8], sizes = [5, 1], strides = [1, 1]} : vector<5x10xf32> to vector<5x1xf32>
    %13 = vector.extract_strided_slice %7 {offsets = [0, 9], sizes = [1, 1], strides = [1, 1]} : vector<5x10xf32> to vector<1x1xf32>
    %14 = vector.extract_strided_slice %4 {offsets = [0, 0], sizes = [4, 1], strides = [1, 1]} : vector<4x2xf32> to vector<4x1xf32>
    %cst_9 = arith.constant 0.001953125 : f32
    %15 = vector.broadcast %cst_9 : f32 to vector<4x1xf32>
    %16 = arith.mulf %14, %15 : vector<4x1xf32>
    %17 = vector.extract_strided_slice %4 {offsets = [0, 1], sizes = [4, 1], strides = [1, 1]} : vector<4x2xf32> to vector<4x1xf32>
    %cst_10 = arith.constant 0.001953125 : f32
    %18 = vector.broadcast %cst_10 : f32 to vector<4x1xf32>
    %19 = arith.mulf %17, %18 : vector<4x1xf32>
    %20 = arith.mulf %16, %16 : vector<4x1xf32>
    %21 = arith.subf %19, %20 : vector<4x1xf32>
    %22 = vector.extract_strided_slice %6 {offsets = [0, 0], sizes = [1, 1], strides = [1, 1]} : vector<1x2xf32> to vector<1x1xf32>
    %cst_11 = arith.constant 0.001953125 : f32
    %23 = vector.broadcast %cst_11 : f32 to vector<1x1xf32>
    %24 = arith.mulf %22, %23 : vector<1x1xf32>
    %25 = vector.extract_strided_slice %6 {offsets = [0, 1], sizes = [1, 1], strides = [1, 1]} : vector<1x2xf32> to vector<1x1xf32>
    %cst_12 = arith.constant 0.001953125 : f32
    %26 = vector.broadcast %cst_12 : f32 to vector<1x1xf32>
    %27 = arith.mulf %25, %26 : vector<1x1xf32>
    %28 = arith.mulf %24, %24 : vector<1x1xf32>
    %29 = arith.subf %27, %28 : vector<1x1xf32>
    %30 = vector.extract_strided_slice %9 {offsets = [0, 0], sizes = [4, 1], strides = [1, 1]} : vector<5x1xf32> to vector<4x1xf32>
    %cst_13 = arith.constant 9.99999974E-6 : f32
    %31 = vector.broadcast %cst_13 : f32 to vector<4x1xf32>
    %32 = arith.addf %21, %31 : vector<4x1xf32>
    %33 = math.rsqrt %32 : vector<4x1xf32>
    %34 = arith.mulf %30, %33 : vector<4x1xf32>
    %35 = vector.extract_strided_slice %10 {offsets = [0, 0], sizes = [4, 1], strides = [1, 1]} : vector<5x1xf32> to vector<4x1xf32>
    %36 = arith.mulf %16, %34 : vector<4x1xf32>
    %37 = arith.subf %35, %36 : vector<4x1xf32>
    %38 = vector.extract_strided_slice %9 {offsets = [4, 0], sizes = [1, 1], strides = [1, 1]} : vector<5x1xf32> to vector<1x1xf32>
    %cst_14 = arith.constant 9.99999974E-6 : f32
    %39 = vector.broadcast %cst_14 : f32 to vector<1x1xf32>
    %40 = arith.addf %29, %39 : vector<1x1xf32>
    %41 = math.rsqrt %40 : vector<1x1xf32>
    %42 = arith.mulf %38, %41 : vector<1x1xf32>
    %43 = vector.extract_strided_slice %10 {offsets = [4, 0], sizes = [1, 1], strides = [1, 1]} : vector<5x1xf32> to vector<1x1xf32>
    %44 = arith.mulf %24, %42 : vector<1x1xf32>
    %45 = arith.subf %43, %44 : vector<1x1xf32>
    %c0_15 = arith.constant 0 : index
    %c0_16 = arith.constant 0 : index
    %c0_17 = arith.constant 0 : index
    %46 = vector.load %arg2[%c0_15, %c0_16, %c0_17] : memref<1x4x128xf32, #tpu.memory_space<vmem>>, vector<1x4x128xf32>
    %47 = vector.shape_cast %46 : vector<1x4x128xf32> to vector<4x128xf32>
    %c0_18 = arith.constant 0 : index
    %c0_19 = arith.constant 0 : index
    %c0_20 = arith.constant 0 : index
    %48 = vector.load %arg3[%c0_18, %c0_19, %c0_20] : memref<1x1x128xf32, #tpu.memory_space<vmem>>, vector<1x1x128xf32>
    %49 = vector.shape_cast %48 : vector<1x1x128xf32> to vector<1x128xf32>
    %50 = vector.broadcast %34 : vector<4x1xf32> to vector<4x128xf32>
    %51 = arith.mulf %47, %50 : vector<4x128xf32>
    %52 = vector.broadcast %37 : vector<4x1xf32> to vector<4x128xf32>
    %53 = arith.addf %51, %52 : vector<4x128xf32>
    %54 = vector.broadcast %42 : vector<1x1xf32> to vector<1x128xf32>
    %55 = arith.mulf %49, %54 : vector<1x128xf32>
    %56 = vector.broadcast %45 : vector<1x1xf32> to vector<1x128xf32>
    %57 = arith.addf %55, %56 : vector<1x128xf32>
    %58 = vector.extract_strided_slice %8 {offsets = [0, 0], sizes = [5, 4], strides = [1, 1]} : vector<5x5xf32> to vector<5x4xf32>
    %cst_21 = arith.constant dense<0.000000e+00> : vector<5x128xf32>
    %59 = tpu.matmul %58, %53, %cst_21 {dimension_numbers = #tpu.dot_dimension_numbers<[1], [0], [0], [1], [0, 0, 1, 1], [], []>} : vector<5x4xf32>, vector<4x128xf32>, vector<5x128xf32> -> vector<5x128xf32>
    %60 = vector.extract_strided_slice %8 {offsets = [0, 4], sizes = [5, 1], strides = [1, 1]} : vector<5x5xf32> to vector<5x1xf32>
    %61 = vector.broadcast %60 : vector<5x1xf32> to vector<5x128xf32>
    %62 = vector.broadcast %57 : vector<1x128xf32> to vector<5x128xf32>
    %63 = arith.mulf %61, %62 : vector<5x128xf32>
    %64 = arith.addf %59, %63 : vector<5x128xf32>
    %65 = vector.broadcast %11 : vector<5x1xf32> to vector<5x128xf32>
    %66 = arith.addf %64, %65 : vector<5x128xf32>
    %cst_22 = arith.constant 0.000000e+00 : f32
    %67 = vector.broadcast %cst_22 : f32 to vector<5x128xf32>
    %68 = arith.maximumf %66, %67 : vector<5x128xf32>
    %69 = vector.broadcast %12 : vector<5x1xf32> to vector<5x128xf32>
    %70 = arith.mulf %69, %68 : vector<5x128xf32>
    %cst_23 = arith.constant dense<0.000000e+00> : vector<128xf32>
    %71 = vector.multi_reduction <add>, %70, %cst_23 [0] : vector<5x128xf32> to vector<128xf32>
    %72 = vector.shape_cast %71 : vector<128xf32> to vector<1x128xf32>
    %73 = vector.broadcast %13 : vector<1x1xf32> to vector<1x128xf32>
    %74 = arith.addf %72, %73 : vector<1x128xf32>
    %75 = arith.truncf %74 : vector<1x128xf32> to vector<1x128xbf16>
    %c0_24 = arith.constant 0 : index
    %c0_25 = arith.constant 0 : index
    %c0_26 = arith.constant 0 : index
    %76 = vector.load %arg7[%c0_24, %c0_25, %c0_26] : memref<1x1x128xbf16, #tpu.memory_space<vmem>>, vector<1x1x128xbf16>
    %77 = vector.shape_cast %76 : vector<1x1x128xbf16> to vector<1x128xbf16>
    %78 = vector.shape_cast %75 : vector<1x128xbf16> to vector<1x1x128xbf16>
    tpu.vector_store %arg7[%c0_24, %c0_25, %c0_26], %78 {strides = array<i32>} : memref<1x1x128xbf16, #tpu.memory_space<vmem>>, vector<1x1x128xbf16>,
    %c0_27 = arith.constant 0 : index
    %c0_28 = arith.constant 0 : index
    %c0_29 = arith.constant 0 : index
    %79 = vector.load %arg8[%c0_27, %c0_28, %c0_29] : memref<1x1x2xf32, #tpu.memory_space<vmem>>, vector<1x1x1xf32>
    %80 = vector.shape_cast %79 : vector<1x1x1xf32> to vector<1x1xf32>
    %cst_30 = arith.constant dense<0.000000e+00> : vector<1xf32>
    %81 = vector.multi_reduction <add>, %74, %cst_30 [1] : vector<1x128xf32> to vector<1xf32>
    %82 = vector.shape_cast %81 : vector<1xf32> to vector<1x1xf32>
    %83 = arith.addf %80, %82 : vector<1x1xf32>
    %c0_31 = arith.constant 0 : index
    %c0_32 = arith.constant 0 : index
    %c0_33 = arith.constant 0 : index
    %84 = vector.load %arg8[%c0_31, %c0_32, %c0_33] : memref<1x1x2xf32, #tpu.memory_space<vmem>>, vector<1x1x1xf32>
    %85 = vector.shape_cast %84 : vector<1x1x1xf32> to vector<1x1xf32>
    %86 = vector.shape_cast %83 : vector<1x1xf32> to vector<1x1x1xf32>
    tpu.vector_store %arg8[%c0_31, %c0_32, %c0_33], %86 {strides = array<i32>} : memref<1x1x2xf32, #tpu.memory_space<vmem>>, vector<1x1x1xf32>,
    %c0_34 = arith.constant 0 : index
    %c0_35 = arith.constant 0 : index
    %c1 = arith.constant 1 : index
    %87 = vector.load %arg8[%c0_34, %c0_35, %c1] : memref<1x1x2xf32, #tpu.memory_space<vmem>>, vector<1x1x1xf32>
    %88 = vector.shape_cast %87 : vector<1x1x1xf32> to vector<1x1xf32>
    %89 = arith.mulf %74, %74 : vector<1x128xf32>
    %cst_36 = arith.constant dense<0.000000e+00> : vector<1xf32>
    %90 = vector.multi_reduction <add>, %89, %cst_36 [1] : vector<1x128xf32> to vector<1xf32>
    %91 = vector.shape_cast %90 : vector<1xf32> to vector<1x1xf32>
    %92 = arith.addf %88, %91 : vector<1x1xf32>
    %c0_37 = arith.constant 0 : index
    %c0_38 = arith.constant 0 : index
    %c1_39 = arith.constant 1 : index
    %93 = vector.load %arg8[%c0_37, %c0_38, %c1_39] : memref<1x1x2xf32, #tpu.memory_space<vmem>>, vector<1x1x1xf32>
    %94 = vector.shape_cast %93 : vector<1x1x1xf32> to vector<1x1xf32>
    %95 = vector.shape_cast %92 : vector<1x1xf32> to vector<1x1x1xf32>
    tpu.vector_store %arg8[%c0_37, %c0_38, %c1_39], %95 {strides = array<i32>} : memref<1x1x2xf32, #tpu.memory_space<vmem>>, vector<1x1x1xf32>,
    return
  }
  func.func @transform_0(%arg0: i32, %arg1: i32) -> (i32, i32, i32) {
    %c0_i32 = arith.constant 0 : i32
    %c0_i32_0 = arith.constant 0 : i32
    return %arg0, %c0_i32, %arg1 : i32, i32, i32
  }
  func.func @transform_1(%arg0: i32, %arg1: i32) -> (i32, i32, i32) {
    %c0_i32 = arith.constant 0 : i32
    %c0_i32_0 = arith.constant 0 : i32
    return %arg0, %c0_i32, %arg1 : i32, i32, i32
  }
  func.func @transform_2(%arg0: i32, %arg1: i32) -> (i32, i32, i32) {
    %c0_i32 = arith.constant 0 : i32
    %c0_i32_0 = arith.constant 0 : i32
    %c0_i32_1 = arith.constant 0 : i32
    %c0_i32_2 = arith.constant 0 : i32
    return %c0_i32, %c0_i32_0, %c0_i32_1 : i32, i32, i32
  }
  func.func @transform_3(%arg0: i32, %arg1: i32) -> (i32, i32, i32) {
    %c0_i32 = arith.constant 0 : i32
    %c0_i32_0 = arith.constant 0 : i32
    %c0_i32_1 = arith.constant 0 : i32
    %c0_i32_2 = arith.constant 0 : i32
    return %c0_i32, %c0_i32_0, %c0_i32_1 : i32, i32, i32
  }
  func.func @transform_4(%arg0: i32, %arg1: i32) -> (i32, i32) {
    %c0_i32 = arith.constant 0 : i32
    %c0_i32_0 = arith.constant 0 : i32
    %c0_i32_1 = arith.constant 0 : i32
    return %c0_i32, %c0_i32_0 : i32, i32
  }
  func.func @transform_5(%arg0: i32, %arg1: i32) -> (i32, i32, i32) {
    %c0_i32 = arith.constant 0 : i32
    %c0_i32_0 = arith.constant 0 : i32
    return %arg0, %c0_i32, %arg1 : i32, i32, i32
  }
  func.func @transform_6(%arg0: i32, %arg1: i32) -> (i32, i32, i32) {
    %c0_i32 = arith.constant 0 : i32
    %c0_i32_0 = arith.constant 0 : i32
    %c0_i32_1 = arith.constant 0 : i32
    return %arg0, %c0_i32, %c0_i32_0 : i32, i32, i32
  }
}

module attributes {stable_mosaic.version = 11 : i64} {
  func.func @_final_kernel(%arg0: i32, %arg1: i32, %arg2: memref<1x4x128xf32, #tpu.memory_space<vmem>>, %arg3: memref<1x1x128xbf16, #tpu.memory_space<vmem>>, %arg4: memref<2x1x2xf32, #tpu.memory_space<vmem>>, %arg5: memref<4x5xf32, #tpu.memory_space<vmem>>, %arg6: memref<1x2xf32, #tpu.memory_space<vmem>>, %arg7: memref<1x4x128xf32, #tpu.memory_space<vmem>>) attributes {dimension_semantics = [#tpu.dimension_semantics<parallel>, #tpu.dimension_semantics<parallel>], iteration_bounds = array<i64: 2, 2>, scalar_prefetch = 0 : i64, scratch_operands = 0 : i64, tpu.core_type = #tpu.core_type<tc>, window_params = [{transform_indices = @transform_0, window_bounds = array<i64: 1, 4, 128>}, {transform_indices = @transform_1, window_bounds = array<i64: 1, 1, 128>}, {pipeline_mode = #tpu.pipeline_mode<synchronous>, transform_indices = @transform_2, window_bounds = array<i64: 2, 1, 2>}, {pipeline_mode = #tpu.pipeline_mode<synchronous>, transform_indices = @transform_3, window_bounds = array<i64: 4, 5>}, {pipeline_mode = #tpu.pipeline_mode<synchronous>, transform_indices = @transform_4, window_bounds = array<i64: 1, 2>}, {transform_indices = @transform_5, window_bounds = array<i64: 1, 4, 128>}]} {
    %c0 = arith.constant 0 : index
    %c0_0 = arith.constant 0 : index
    %c0_1 = arith.constant 0 : index
    %0 = vector.load %arg4[%c0, %c0_0, %c0_1] : memref<2x1x2xf32, #tpu.memory_space<vmem>>, vector<2x1x2xf32>
    %cst = arith.constant dense<0.000000e+00> : vector<1x2xf32>
    %1 = vector.multi_reduction <add>, %0, %cst [0] : vector<2x1x2xf32> to vector<1x2xf32>
    %2 = vector.extract_strided_slice %1 {offsets = [0, 0], sizes = [1, 1], strides = [1, 1]} : vector<1x2xf32> to vector<1x1xf32>
    %cst_2 = arith.constant 0.001953125 : f32
    %3 = vector.broadcast %cst_2 : f32 to vector<1x1xf32>
    %4 = arith.mulf %2, %3 : vector<1x1xf32>
    %5 = vector.extract_strided_slice %1 {offsets = [0, 1], sizes = [1, 1], strides = [1, 1]} : vector<1x2xf32> to vector<1x1xf32>
    %cst_3 = arith.constant 0.001953125 : f32
    %6 = vector.broadcast %cst_3 : f32 to vector<1x1xf32>
    %7 = arith.mulf %5, %6 : vector<1x1xf32>
    %8 = arith.mulf %4, %4 : vector<1x1xf32>
    %9 = arith.subf %7, %8 : vector<1x1xf32>
    %c0_4 = arith.constant 0 : index
    %c0_5 = arith.constant 0 : index
    %10 = vector.load %arg5[%c0_4, %c0_5] : memref<4x5xf32, #tpu.memory_space<vmem>>, vector<4x5xf32>
    %11 = vector.extract_strided_slice %10 {offsets = [0, 0], sizes = [4, 4], strides = [1, 1]} : vector<4x5xf32> to vector<4x4xf32>
    %12 = vector.extract_strided_slice %10 {offsets = [0, 4], sizes = [4, 1], strides = [1, 1]} : vector<4x5xf32> to vector<4x1xf32>
    %c0_6 = arith.constant 0 : index
    %c0_7 = arith.constant 0 : index
    %13 = vector.load %arg6[%c0_6, %c0_7] : memref<1x2xf32, #tpu.memory_space<vmem>>, vector<1x2xf32>
    %14 = vector.extract_strided_slice %13 {offsets = [0, 0], sizes = [1, 1], strides = [1, 1]} : vector<1x2xf32> to vector<1x1xf32>
    %15 = vector.extract_strided_slice %13 {offsets = [0, 1], sizes = [1, 1], strides = [1, 1]} : vector<1x2xf32> to vector<1x1xf32>
    %c0_8 = arith.constant 0 : index
    %c0_9 = arith.constant 0 : index
    %c0_10 = arith.constant 0 : index
    %16 = vector.load %arg3[%c0_8, %c0_9, %c0_10] : memref<1x1x128xbf16, #tpu.memory_space<vmem>>, vector<1x1x128xbf16>
    %17 = vector.shape_cast %16 : vector<1x1x128xbf16> to vector<1x128xbf16>
    %18 = arith.extf %17 : vector<1x128xbf16> to vector<1x128xf32>
    %19 = vector.broadcast %4 : vector<1x1xf32> to vector<1x128xf32>
    %20 = arith.subf %18, %19 : vector<1x128xf32>
    %cst_11 = arith.constant 9.99999974E-6 : f32
    %21 = vector.broadcast %cst_11 : f32 to vector<1x1xf32>
    %22 = arith.addf %9, %21 : vector<1x1xf32>
    %23 = math.rsqrt %22 : vector<1x1xf32>
    %24 = arith.mulf %14, %23 : vector<1x1xf32>
    %25 = vector.broadcast %24 : vector<1x1xf32> to vector<1x128xf32>
    %26 = arith.mulf %20, %25 : vector<1x128xf32>
    %27 = vector.broadcast %15 : vector<1x1xf32> to vector<1x128xf32>
    %28 = arith.addf %26, %27 : vector<1x128xf32>
    %29 = arith.negf %28 : vector<1x128xf32>
    %30 = math.exp %29 : vector<1x128xf32>
    %cst_12 = arith.constant 1.000000e+00 : f32
    %31 = vector.broadcast %cst_12 : f32 to vector<1x128xf32>
    %32 = arith.addf %31, %30 : vector<1x128xf32>
    %33 = arith.divf %31, %32 : vector<1x128xf32>
    %c0_13 = arith.constant 0 : index
    %c0_14 = arith.constant 0 : index
    %c0_15 = arith.constant 0 : index
    %34 = vector.load %arg2[%c0_13, %c0_14, %c0_15] : memref<1x4x128xf32, #tpu.memory_space<vmem>>, vector<1x4x128xf32>
    %35 = vector.shape_cast %34 : vector<1x4x128xf32> to vector<4x128xf32>
    %cst_16 = arith.constant 1.000000e+00 : f32
    %36 = vector.broadcast %cst_16 : f32 to vector<1x128xf32>
    %37 = arith.addf %33, %36 : vector<1x128xf32>
    %38 = vector.broadcast %37 : vector<1x128xf32> to vector<4x128xf32>
    %39 = arith.mulf %35, %38 : vector<4x128xf32>
    %cst_17 = arith.constant dense<0.000000e+00> : vector<4x128xf32>
    %40 = tpu.matmul %11, %39, %cst_17 {dimension_numbers = #tpu.dot_dimension_numbers<[1], [0], [0], [1], [0, 0, 1, 1], [], []>} : vector<4x4xf32>, vector<4x128xf32>, vector<4x128xf32> -> vector<4x128xf32>
    %41 = vector.broadcast %12 : vector<4x1xf32> to vector<4x128xf32>
    %42 = arith.addf %40, %41 : vector<4x128xf32>
    %c0_18 = arith.constant 0 : index
    %c0_19 = arith.constant 0 : index
    %c0_20 = arith.constant 0 : index
    %43 = vector.load %arg7[%c0_18, %c0_19, %c0_20] : memref<1x4x128xf32, #tpu.memory_space<vmem>>, vector<1x4x128xf32>
    %44 = vector.shape_cast %43 : vector<1x4x128xf32> to vector<4x128xf32>
    %45 = vector.shape_cast %42 : vector<4x128xf32> to vector<1x4x128xf32>
    tpu.vector_store %arg7[%c0_18, %c0_19, %c0_20], %45 {strides = array<i32>} : memref<1x4x128xf32, #tpu.memory_space<vmem>>, vector<1x4x128xf32>,
    return
  }
  func.func @transform_0(%arg0: i32, %arg1: i32) -> (i32, i32, i32) {
    %c0_i32 = arith.constant 0 : i32
    %c0_i32_0 = arith.constant 0 : i32
    return %arg0, %c0_i32, %arg1 : i32, i32, i32
  }
  func.func @transform_1(%arg0: i32, %arg1: i32) -> (i32, i32, i32) {
    %c0_i32 = arith.constant 0 : i32
    %c0_i32_0 = arith.constant 0 : i32
    return %arg0, %c0_i32, %arg1 : i32, i32, i32
  }
  func.func @transform_2(%arg0: i32, %arg1: i32) -> (i32, i32, i32) {
    %c0_i32 = arith.constant 0 : i32
    %c0_i32_0 = arith.constant 0 : i32
    %c0_i32_1 = arith.constant 0 : i32
    %c0_i32_2 = arith.constant 0 : i32
    return %c0_i32, %c0_i32_0, %c0_i32_1 : i32, i32, i32
  }
  func.func @transform_3(%arg0: i32, %arg1: i32) -> (i32, i32) {
    %c0_i32 = arith.constant 0 : i32
    %c0_i32_0 = arith.constant 0 : i32
    %c0_i32_1 = arith.constant 0 : i32
    return %c0_i32, %c0_i32_0 : i32, i32
  }
  func.func @transform_4(%arg0: i32, %arg1: i32) -> (i32, i32) {
    %c0_i32 = arith.constant 0 : i32
    %c0_i32_0 = arith.constant 0 : i32
    %c0_i32_1 = arith.constant 0 : i32
    return %c0_i32, %c0_i32_0 : i32, i32
  }
  func.func @transform_5(%arg0: i32, %arg1: i32) -> (i32, i32, i32) {
    %c0_i32 = arith.constant 0 : i32
    %c0_i32_0 = arith.constant 0 : i32
    return %arg0, %c0_i32, %arg1 : i32, i32, i32
  }
}

</mosaic_0001>

<bundles_post_ra>
// kernel: guide_flow_forward.5
= control target key start
LH: loop header
LB: loop body
LE: loop exit
PB: predicated region body
PF: predicated region fallthrough
CT: control target
= control target key end

     0   :  { %s334_s6 = smov 0   ;;  %s336_s7 = smov 0   ;;  %s385_s0 = inlined_call_operand.vmem [shape: f32[2,4,256], index: 0, kind: input, shape index: {}]   ;;  %s386_s1 = inlined_call_operand.vmem [shape: f32[2,4,2], index: 1, kind: output, shape index: {}]  }
   0x1   :  { %s338_s8 = smov 0   ;;  %s340_s9 = smov 0  }
   0x2   :  { %s342_s10 = smov 0  }
   0x3 LB: > { %s20_s11 = sadd.s32 1, %s313_s8  ;;  %s23_s12 = sadd.s32 1, %s317_s9  ;;  %s321_s10 = sphi %s342_s10, %s11_s10   ;;  %s317_s9 = sphi %s340_s9, %s390_s9   ;;  %s313_s8 = sphi %s338_s8, %s389_s8   ;;  %s309_s7 = sphi %s336_s7, %s388_s7   ;;  %s305_s6 = sphi %s334_s6, %s387_s6  }
   0x4   : > { %p21_p0 = scmp.ge.s32.totalorder %s20_s11, 2  ;;  %p235_p1 = scmp.ge.s32.totalorder %s321_s10, 1 }
   0x5   : > { %p104_p2 = scmp.lt.s32.totalorder %s321_s10, 5 }
   0x6   : > { %s392_s11 = smov (%p21_p0, %s20_s11), 0  ;;  %s394_s12 = smov (!%p21_p0, %s23_s12), %s317_s9 }
   0x7   : > { %p105_p3 = pnand %p235_p1, %p104_p2  ;;  %p25_p4 = scmp.ge.s32.totalorder %s394_s12, 2 }
   0x8   : > { %p126_p5 = scmp.lt.s32.totalorder (!%p105_p3), %s309_s7, 1  ;;  %p128_p6 = scmp.lt.s32.totalorder (!%p105_p3), %s305_s6, 1 }
   0x9   : > { %s396_s12 = smov (%p25_p4, %s394_s12), 0  ;;  %108 = sbr.rel (%p105_p3) target bundleno = 156 (0x9c), region = 24 }
   0xa   : > { %p239_p7 = scmp.ne.s32.totalorder (!%p105_p3), %s305_s6, 0 }
   0xe   : > { %s398_s7 = smov (!%p126_p5, %s309_s7), 1 }
   0xf   : > { %s129_s13 = scalar_select %p128_p6, %s305_s6, 1 }
  0x10   : > { %s236_s14 = sshll.u32 %s398_s7, 1  ;;  %s238_s15 = sshll.u32 %s398_s7, 2 }
  0x11   : > { %s131_s16 = sadd.s32 %s236_s14, %s129_s13  ;;  %s137_s19 = scalar_lea.vmem %s386_s1, %s238_s15 }
  0x12   : > { %s237_s20 = sshll.u32 %s131_s16, 2  ;;  %141 = sbr.rel (%p239_p7) target bundleno = 25 (0x19), region = 28 }
  0x13   : > { %s133_s23 = scalar_lea.vmem %s385_s0, %s237_s20 }
  0x17   : > { %vm142_vm0 = vcmask 11264   ;;  %v323_v0 = vmov 0.0  }
  0x18   : > { %143 = vst.msk [vmem:[%s137_s19] sm:$0xf] %vm142_vm0, %v323_v0 }
  0x19 PF: > { %v144_v1 = vld [vmem:[%s133_s23] sm:$0xf]  ;;  %vm146_vm1 = vcmask 1043456   ;;  %vm151_vm2 = vcmask 3072   ;;  %vm159_vm3 = vcmask 11272  }
  0x1a   : > { %v147_v2 = vsel %vm146_vm1, %v144_v1, 0.0  ;;  %v154_v3 = vmul.f32 %v144_v1, %v144_v1 }
  0x1b   : > { %148 = vadd.xlane.f32.xlu0 %v147_v2 }
  0x1c   : > { %v155_v4 = vsel %vm146_vm1, %v154_v3, 0.0 }
  0x1f   : > { %v145_v5 = vld [vmem:[%s137_s19] sm:$0xf] }
  0x23   : > { %156 = vadd.xlane.f32.xlu0 %v155_v4 }
  0x8e   : > { %v149_v6 = vpop.xlane.xlu0 %148 }
  0x8f   : > { %v150_v7 = vadd.f32 %v149_v6, %v145_v5 }
  0x91   : > { %152 = vst.msk [vmem:[%s137_s19] sm:$0xf] %vm151_vm2, %v150_v7 }
  0x96   : > { %v157_v8 = vpop.xlane.xlu0 %156 }
  0x98   : > { %v153_v9 = vld [vmem:[%s137_s19] sm:$0xf] }
  0x99   : > { %v158_v10 = vadd.f32 %v157_v8, %v153_v9 }
  0x9b   : > { %160 = vst.msk [vmem:[%s137_s19] sm:$0xf] %vm159_vm3, %v158_v10 }
  0x9c PF: > { %s11_s10 = sadd.s32 1, %s321_s10   ;;  %s387_s6 = smov %s313_s8 }
  0x9d   : > { %p8_p8 = scmp.ge.s32.totalorder %s11_s10, 6   ;;  %s388_s7 = smov %s317_s9 }
  0x9e   : > { %s389_s8 = smov %s392_s11  ;;  %s390_s9 = smov %s396_s12 }
  0x9f   :  { %10 = sbr.rel (!%p8_p8) target bundleno = 3 (0x3), region = 58 }

// kernel: guide_flow_forward.4
= control target key start
LH: loop header
LB: loop body
LE: loop exit
PB: predicated region body
PF: predicated region fallthrough
CT: control target
= control target key end

     0   :  { %s599_s23 = smov 0   ;;  %s644_s0 = inlined_call_operand.vmem [shape: f32[2,8,8,4], index: 0, kind: input, shape index: {}]   ;;  %s645_s1 = inlined_call_operand.vmem [shape: f32[1,4], index: 1, kind: input, shape index: {}]   ;;  %s646_s2 = inlined_call_operand.<no memory space> [shape: f32[1,1], index: 2, kind: input, shape index: {}]   ;;  %s647_s3 = inlined_call_operand.vmem [shape: f32[16,8], index: 3, kind: input, shape index: {}]   ;;  %s648_s4 = inlined_call_operand.vmem [shape: f32[8,16], index: 4, kind: input, shape index: {}]   ;;  %s649_s5 = inlined_call_operand.vmem [shape: f32[2,1,16,16], index: 5, kind: output, shape index: {0}]   ;;  %s650_s6 = inlined_call_operand.vmem [shape: f32[2,1,2], index: 6, kind: output, shape index: {1}]  }
   0x1   :  { %v12_v0 = vstv %s646_s2 }
   0x2   :  { %13 = vst [vmem:[#allocation2] sm:$0x1] %v12_v0 }
   0x3 LB: > { %s521_s24 = sadd.s32 4294967295, %s559_s23   ;;  %p525_p0 = scmp.ge.s32.totalorder %s559_s23, 1  ;;  %s559_s23 = sphi %s599_s23, %s19_s23  }
   0x4   : > { %p217_p1 = scmp.lt.s32.totalorder %s559_s23, 3 }
   0x6   : > { %p218_p2 = pnand %p525_p0, %p217_p1 }
   0x7   : > { %p250_p3 = scmp.lt.s32.totalorder (!%p218_p2), %s521_s24, 1 }
   0x8   : > { %221 = sbr.rel (%p218_p2) target bundleno = 602 (0x25a), region = 40 }
   0xd   : > { %v308_v1 = vld [vmem:[#allocation2] sm:$0x1]  ;;  %s652_s24 = smov (!%p250_p3, %s521_s24), 1  ;;  %vm283_vm0 = vcmask 31744   ;;  %v328_v31 = vlaneseq  ;;  %vm338_vm1 = vcmask 1041409   ;;  %vm340_vm2 = vcmask 1042434  }
   0xe   : > { %538 = vpush %v308_v1  ;;  %v552_v2 = vld [vmem:[%s645_s1] ss:$0 sm:$0xff]  ;;  %s535_s26 = sshll.u32 %s652_s24, 6  ;;  %vm342_vm3 = vcmask 1043459   ;;  %vm344_vm4 = vcmask 1044484   ;;  %vm346_vm5 = vcmask 1045509   ;;  %s262_s19 = scalar_lea.vmem %s650_s6, %s652_s24 }
   0xf   : > { %s254_s29 = scalar_lea.vmem %s644_s0, %s535_s26  ;;  %v319_v27 = vld [vmem:[%s648_s4] sm:$0xff]  ;;  %v329_v33 = vand.u32 127, %v328_v31  ;;  %vm348_vm6 = vcmask 1046534   ;;  %vm350_vm7 = vcmask 1047559   ;;  %vm352_vm8 = vcmask 64512   ;;  %v376_v62 = vld [vmem:[%s647_s3 + $0x8] sm:$0xff] }
  0x10   : > { %v265_v3 = vld [vmem:[%s254_s29 + $0x10] sm:$0xff]  ;;  %v263_v4 = vld [vmem:[%s254_s29] sm:$0xff]  ;;  %v266_v9 = vld [vmem:[%s254_s29 + $0x18] sm:$0xff]  ;;  %370 = vmatpush.msra.mxu0 %v319_v27  ;;  %s536_s13 = sshll.u32 %s652_s24, 4  ;;  %vm406_vm9 = vcmask 130048   ;;  %vm422_vm10 = vcmask 0  }
  0x11   : > { %v267_v5 = vld [vmem:[%s254_s29 + $0x20] sm:$0xff]  ;;  %v277_v6 = vmul.f32 %v552_v2, %v265_v3  ;;  %v275_v7 = vmul.f32 %v552_v2, %v263_v4  ;;  %v264_v10 = vld [vmem:[%s254_s29 + $0x8] sm:$0xff]  ;;  %v278_v15 = vmul.f32 %v552_v2, %v266_v9  ;;  %v270_v21 = vld [vmem:[%s254_s29 + $0x38] sm:$0xff]  ;;  %s259_s16 = scalar_lea.vmem %s649_s5, %s536_s13  ;;  %vm439_vm11 = vcmask 8200  }
  0x12   : > { %v279_v8 = vmul.f32 %v552_v2, %v267_v5  ;;  %v268_v14 = vld [vmem:[%s254_s29 + $0x28] sm:$0xff]  ;;  %v276_v16 = vmul.f32 %v552_v2, %v264_v10  ;;  %v269_v22 = vld [vmem:[%s254_s29 + $0x30] sm:$0xff]  ;;  %v282_v23 = vmul.f32 %v552_v2, %v270_v21  ;;  %v375_v63 = vld [vmem:[%s647_s3] sm:$0xff] }
  0x13   : > { %v290_v11 = vsel %vm283_vm0, %v277_v6, 0.0  ;;  %v284_v12 = vsel %vm283_vm0, %v275_v7, 0.0  ;;  %v280_v17 = vmul.f32 %v552_v2, %v268_v14  ;;  %v293_v18 = vsel %vm283_vm0, %v278_v15, 0.0 }
  0x14   : > { %v296_v13 = vsel %vm283_vm0, %v279_v8, 0.0  ;;  %291 = vadd.xlane.f32.xlu1 %v290_v11  ;;  %285 = vadd.xlane.f32.xlu0 %v284_v12  ;;  %v287_v19 = vsel %vm283_vm0, %v276_v16, 0.0  ;;  %v281_v24 = vmul.f32 %v552_v2, %v269_v22  ;;  %v305_v25 = vsel %vm283_vm0, %v282_v23, 0.0 }
  0x15   : > { %297 = vadd.xlane.f32.xlu2 %v296_v13  ;;  %v299_v20 = vsel %vm283_vm0, %v280_v17, 0.0 }
  0x16   : > { %v302_v26 = vsel %vm283_vm0, %v281_v24, 0.0 }
  0x1c   : > { %294 = vadd.xlane.f32.xlu1 %v293_v18  ;;  %288 = vadd.xlane.f32.xlu0 %v287_v19 }
  0x1d   : > { %300 = vadd.xlane.f32.xlu2 %v299_v20 }
  0x24   : > { %306 = vadd.xlane.f32.xlu1 %v305_v25  ;;  %303 = vadd.xlane.f32.xlu0 %v302_v26 }
  0x3f   : > { %s539_s8 = spop %538 }
  0x40   : > { %v310_v32 = vstv %s539_s8 }
  0x87   : > { %v292_v28 = vpop.xlane.xlu1 %291  ;;  %v286_v29 = vpop.xlane.xlu0 %285 }
  0x88   : > { %v298_v30 = vpop.xlane.xlu2 %297  ;;  %v311_v34 = vadd.f32 %v310_v32, %v286_v29  ;;  %v313_v35 = vadd.f32 %v310_v32, %v292_v28 }
  0x89   : > { %v315_v42 = vadd.f32 %v310_v32, %v298_v30 }
  0x8a   : > { %v330_v41 = vperm.slane %v311_v34, %v329_v33  ;;  %v332_v45 = vperm.slane %v313_v35, %v329_v33 }
  0x8b   : > { %v334_v49 = vperm.slane %v315_v42, %v329_v33 }
  0x8f   : > { %v295_v36 = vpop.xlane.xlu1 %294  ;;  %v289_v37 = vpop.xlane.xlu0 %288 }
  0x90   : > { %v314_v38 = vadd.f32 %v310_v32, %v295_v36  ;;  %v312_v39 = vadd.f32 %v310_v32, %v289_v37  ;;  %v301_v40 = vpop.xlane.xlu2 %300 }
  0x91   : > { %v316_v46 = vadd.f32 %v310_v32, %v301_v40 }
  0x92   : > { %v333_v43 = vperm.slane %v314_v38, %v329_v33  ;;  %v331_v44 = vperm.slane %v312_v39, %v329_v33 }
  0x93   : > { %v335_v51 = vperm.slane %v316_v46, %v329_v33 }
  0x94   : > { %v339_v47 = vsel %vm338_vm1, %v331_v44, %v330_v41 }
  0x95   : > { %v341_v48 = vsel %vm340_vm2, %v332_v45, %v339_v47 }
  0x96   : > { %v343_v50 = vsel %vm342_vm3, %v333_v43, %v341_v48 }
  0x97   : > { %v307_v52 = vpop.xlane.xlu1 %306  ;;  %v304_v53 = vpop.xlane.xlu0 %303  ;;  %v345_v56 = vsel %vm344_vm4, %v334_v49, %v343_v50 }
  0x98   : > { %v318_v54 = vadd.f32 %v310_v32, %v307_v52  ;;  %v317_v55 = vadd.f32 %v310_v32, %v304_v53  ;;  %v347_v59 = vsel %vm346_vm5, %v335_v51, %v345_v56 }
  0x9a   : > { %v337_v57 = vperm.slane %v318_v54, %v329_v33  ;;  %v336_v58 = vperm.slane %v317_v55, %v329_v33 }
  0x9c   : > { %v349_v60 = vsel %vm348_vm6, %v336_v58, %v347_v59 }
  0x9d   : > { %v351_v61 = vsel %vm350_vm7, %v337_v57, %v349_v60 }
  0x9e   : > { %530 = vmatmul.msk.f32.vlgmr.msra.gmra.mxu0 %vm352_vm8, %v351_v61 }
 0x11b   : > { %v372_v0 = vpop.f32.mrf.mxu0 }
 0x11c   : > { %398 = vmatpush.msra.mxu1 %v372_v0  ;;  %537 = vmatpush.msra.mxu2 %v372_v0 }
 0x11d   : > { %532 = vmatmul.msk.f32.vlgmr.msra.gmra.mxu2 %vm352_vm8, %v376_v62  ;;  %531 = vmatmul.msk.f32.vlgmr.msra.gmra.mxu1 %vm352_vm8, %v375_v63 }
 0x19a   : > { %v400_v1 = vpop.f32.mrf.mxu1 }
 0x19b   : > { %407 = vst.msk [vmem:[%s259_s16] sm:$0xff] %vm406_vm9, %v400_v1  ;;  %v424_v2 = vmul.f32 %v400_v1, %v400_v1  ;;  %v409_v3 = vsel %vm406_vm9, %v400_v1, 0.0 }
 0x19d   : > { %v426_v7 = vsel %vm406_vm9, %v424_v2, 0.0 }
 0x1a0   : > { %v403_v4 = vpop.f32.mrf.mxu2 }
 0x1a1   : > { %408 = vst.msk [vmem:[%s259_s16 + $0x8] sm:$0xff] %vm406_vm9, %v403_v4  ;;  %v410_v5 = vsel %vm406_vm9, %v403_v4, 0.0  ;;  %v425_v6 = vmul.f32 %v403_v4, %v403_v4 }
 0x1a2   : > { %v411_v8 = vadd.f32 %v410_v5, %v409_v3 }
 0x1a3   : > { %v427_v9 = vsel %vm406_vm9, %v425_v6, 0.0 }
 0x1a4   : > { %412 = vadd.xlane.f32.xlu2 %v411_v8  ;;  %v428_v10 = vadd.f32 %v427_v9, %v426_v7 }
 0x1a6   : > { %429 = vadd.xlane.f32.xlu0 %v428_v10 }
 0x217   : > { %v413_v11 = vpop.xlane.xlu2 %412 }
 0x218   : > { %v414_v12 = vrot.slane %v413_v11, 4 }
 0x219   : > { %v430_v13 = vpop.xlane.xlu0 %429 }
 0x21a   : > { %v415_v14 = vadd.f32 %v414_v12, %v413_v11  ;;  %v431_v15 = vrot.slane %v430_v13, 4 }
 0x21c   : > { %v416_v16 = vrot.slane %v415_v14, 2  ;;  %v432_v17 = vadd.f32 %v431_v15, %v430_v13 }
 0x21e   : > { %v417_v18 = vadd.f32 %v416_v16, %v415_v14  ;;  %v433_v19 = vrot.slane %v432_v17, 2 }
 0x220   : > { %v434_v20 = vadd.f32 %v433_v19, %v432_v17  ;;  %v418_v21 = vrot.slane %v417_v18, 1 }
 0x222   : > { %v419_v22 = vadd.f32 %v418_v21, %v417_v18  ;;  %v435_v23 = vrot.slane %v434_v20, 1 }
 0x224   : > { %540 = vpush %v419_v22  ;;  %v436_v24 = vadd.f32 %v435_v23, %v434_v20 }
 0x226   : > { %542 = vpush %v436_v24 }
 0x255   : > { %s541_s20 = spop %540 }
 0x256   : > { %v421_v25 = vstv %s541_s20 }
 0x257   : > { %423 = vst.msk [vmem:[%s262_s19] sm:$0x1] %vm422_vm10, %v421_v25  ;;  %s543_s21 = spop %542 }
 0x258   : > { %v438_v26 = vstv %s543_s21 }
 0x259   : > { %440 = vst.msk [vmem:[%s262_s19] sm:$0x1] %vm439_vm11, %v438_v26 }
 0x25a PF: > { %s19_s23 = sadd.s32 1, %s559_s23  }
 0x25b   : > { %p16_p4 = scmp.ge.s32.totalorder %s19_s23, 4  }
 0x25d   :  { %18 = sbr.rel (!%p16_p4) target bundleno = 3 (0x3), region = 82 }

// kernel: guide_flow_forward.6
= control target key start
LH: loop header
LB: loop body
LE: loop exit
PB: predicated region body
PF: predicated region fallthrough
CT: control target
= control target key end

     0   :  { %s799_s21 = smov 0   ;;  %s801_s22 = smov 0   ;;  %s914_s0 = inlined_call_operand.vmem [shape: f32[2,4,256], index: 0, kind: input, shape index: {}]   ;;  %s915_s1 = inlined_call_operand.vmem [shape: f32[2,1,256], index: 1, kind: input, shape index: {}]   ;;  %s916_s2 = inlined_call_operand.vmem [shape: f32[2,4,2], index: 2, kind: input, shape index: {}]   ;;  %s917_s3 = inlined_call_operand.vmem [shape: f32[2,1,2], index: 3, kind: input, shape index: {}]   ;;  %s918_s4 = inlined_call_operand.vmem [shape: f32[5,10], index: 4, kind: input, shape index: {}]   ;;  %s919_s5 = inlined_call_operand.vmem [shape: bf16[2,1,256], index: 5, kind: output, shape index: {0}]   ;;  %s920_s6 = inlined_call_operand.vmem [shape: f32[2,1,2], index: 6, kind: output, shape index: {1}]  }
   0x1   :  { %s803_s23 = smov 0   ;;  %s805_s24 = smov 0  }
   0x2   :  { %s807_s25 = smov 0  }
   0x3 LB: > { %s26_s26 = sadd.s32 1, %s743_s23  ;;  %s29_s27 = sadd.s32 1, %s747_s24  ;;  %s751_s25 = sphi %s807_s25, %s17_s25   ;;  %s747_s24 = sphi %s805_s24, %s924_s24   ;;  %s743_s23 = sphi %s803_s23, %s923_s23   ;;  %s739_s22 = sphi %s801_s22, %s922_s22   ;;  %s735_s21 = sphi %s799_s21, %s921_s21  }
   0x4   : > { %p27_p0 = scmp.ge.s32.totalorder %s26_s26, 2  ;;  %p639_p1 = scmp.ge.s32.totalorder %s751_s25, 1 }
   0x5   : > { %p248_p2 = scmp.lt.s32.totalorder %s751_s25, 5 }
   0x6   : > { %s926_s26 = smov (%p27_p0, %s26_s26), 0  ;;  %s928_s27 = smov (!%p27_p0, %s29_s27), %s747_s24 }
   0x7   : > { %p249_p3 = pnand %p639_p1, %p248_p2  ;;  %p31_p4 = scmp.ge.s32.totalorder %s928_s27, 2 }
   0x8   : > { %p293_p5 = scmp.lt.s32.totalorder (!%p249_p3), %s739_s22, 1  ;;  %p295_p6 = scmp.lt.s32.totalorder (!%p249_p3), %s735_s21, 1 }
   0x9   : > { %s930_s27 = smov (%p31_p4, %s928_s27), 0  ;;  %252 = sbr.rel (%p249_p3) target bundleno = 1016 (0x3f8), region = 40 }
   0xa   : > { %p644_p7 = scmp.ne.s32.totalorder (!%p249_p3), %s735_s21, 0 }
   0xe   : > { %s932_s22 = smov (!%p293_p5, %s739_s22), 1 }
   0xf   : > { %s296_s28 = scalar_select %p295_p6, %s735_s21, 1 }
  0x10   : > { %s640_s29 = sshll.u32 %s932_s22, 1  ;;  %s832_s8 = scalar_lea.vmem %s920_s6, %s932_s22 }
  0x11   : > { %s834_s9 = sadd.s32 %s640_s29, %s296_s28  ;;  %321 = sbr.rel (%p644_p7) target bundleno = 24 (0x18), region = 44 }
  0x12   : > { %s641_s10 = sshll.u32 %s834_s9, 2  ;;  %s307_s13 = scalar_lea.vmem %s915_s1, %s834_s9 }
  0x13   : > { %s844_s16 = scalar_lea.vmem %s914_s0, %s641_s10  ;;  %s850_s19 = scalar_lea.vmem %s919_s5, %s834_s9 }
  0x16   : > { %vm322_vm0 = vcmask 8192   ;;  %v753_v0 = vmov 0.0  }
  0x17   : > { %323 = vst.msk [vmem:[%s832_s8] sm:$0x1] %vm322_vm0, %v753_v0 }
  0x18 PF: > { %v324_v1 = vld [vmem:[%s916_s2] sm:$0xf]  ;;  %v325_v2 = vld [vmem:[%s916_s2 + $0x4] sm:$0xf]  ;;  %vm326_vm1 = vcmask 11264   ;;  %s754_s21 = smov 1  }
  0x19   : > { %v327_v3 = vsel %vm326_vm1, %v324_v1, 0.0  ;;  %v328_v4 = vsel %vm326_vm1, %v325_v2, 0.0  ;;  %s755_s30 = smov 4   ;;  %v756_v18 = vmov 5   ;;  %v330_v19 = vld [vmem:[%s917_s3] sm:$0x1] }
  0x1a   : > { %v329_v5 = vadd.f32 %v328_v4, %v327_v3  ;;  %700 = vset.pattern.permute.xlu0 %v756_v18  ;;  %702 = vset.pattern.permute.xlu2 %v756_v18  ;;  %v331_v20 = vld [vmem:[%s917_s3 + $0x1] sm:$0x1]  ;;  %vm332_vm5 = vcmask 8192   ;;  %s757_s17 = smov 123   ;;  %s758_s18 = smov 6   ;;  %v759_v42 = vmov 6  }
  0x1b   : > { %v333_v21 = vsel %vm332_vm5, %v330_v19, 0.0  ;;  %v334_v22 = vsel %vm332_vm5, %v331_v20, 0.0  ;;  %v870_v23 = vld [vmem:[%s918_s4] sm:$0x1f]  ;;  %701 = vset.pattern.permute.xlu1 %v759_v42  ;;  %vm444_vm9 = vcmask 1043456   ;;  %vm441_vm10 = vcmask 31744  }
  0x1c   : > { %v337_v6 = vmul.f32 0.001953125, %v329_v5  ;;  %v335_v24 = vadd.f32 %v334_v22, %v333_v21  ;;  %v406_v48 = vld [vmem:[%s844_s16] sm:$0xf]  ;;  %v760_v56 = vmov 4   ;;  %v761_v57 = vmov 7  }
  0x1d   : > { %v762_v58 = vmov 8   ;;  %v763_v59 = vmov 9   ;;  %v407_v0 = vld [vmem:[%s307_s13] sm:$0x1]  ;;  %vm479_vm11 = vcmask 1044480   ;;  %vm493_vm12 = vcmask 1040384  }
  0x1e   : > { %v338_v7 = vmul.f32 %v337_v6, %v337_v6  ;;  %v344_v27 = vmul.f32 0.001953125, %v335_v24  ;;  %vm494_vm13 = vsmask.f32 256  ;;  %v496_v24 = vld [vmem:[%s850_s19] sm:$0x1]  ;;  %vm505_vm15 = vcmask 0  }
  0x1f   : > { %vm495_vm14 = vmand %vm493_vm12, %vm494_vm13  ;;  %vm513_vm0 = vcmask 8200  }
  0x20   : > { %340 = vrot.lane.b32.xlu0 %v338_v7, %s754_s21  ;;  %v345_v28 = vmul.f32 %v344_v27, %v344_v27 }
  0x92   : > { %v341_v8 = vpop.permute.xlu0 %340 }
  0x93   : > { %v343_v9 = vsub.f32 %v337_v6, %v341_v8 }
  0x95   : > { %v351_v10 = vadd.f32 1e-05, %v343_v9 }
  0x97   : > { %709 = vrsqrt.f32 %v351_v10  ;;  %vm358_vm3 = vweird.f32 %v351_v10 }
  0x9d   : > { %v710_v11 = vpop.eup %709 }
  0x9e   : > { %v353_v12 = vmul.f32 %v710_v11, %v351_v10  ;;  %vm359_vm2 = vweird.f32 %v710_v11 }
  0x9f   : > { %vm360_vm4 = vmor %vm358_vm3, %vm359_vm2 }
  0xa0   : > { %v354_v13 = vmul.f32 %v710_v11, %v353_v12 }
  0xa2   : > { %v355_v14 = vmul.f32 0.5, %v354_v13 }
  0xa4   : > { %v356_v15 = vsub.f32 1.5, %v355_v14 }
  0xa6   : > { %v357_v16 = vmul.f32 %v710_v11, %v356_v15 }
  0xa8   : > { %v361_v17 = vsel %vm360_vm4, %v710_v11, %v357_v16 }
  0xa9   : > { %363 = vrot.lane.b32.xlu0 %v361_v17, %s755_s30 }
 0x11b   : > { %v364_v25 = vpop.permute.xlu0 %363 }
 0x11c   : > { %v366_v26 = vmul.f32 %v364_v25, %v870_v23 }
 0x11e   : > { %409 = vperm.xlu0 %700, %v366_v26   ;;  %368 = vrot.lane.b32.xlu1 %v366_v26, %s757_s17 }
 0x126   : > { %347 = vrot.lane.b32.xlu1 %v345_v28, %s754_s21  ;;  %703 = vset.pattern.permute.xlu0 %v759_v42 }
 0x190   : > { %v369_v29 = vpop.permute.xlu1 %368  ;;  %v410_v49 = vpop.permute.xlu0 %409 }
 0x191   : > { %v371_v30 = vmul.f32 %v369_v29, %v337_v6  ;;  %v412_v50 = vmul.f32 %v410_v49, %v406_v48 }
 0x193   : > { %373 = vrot.lane.b32.xlu2 %v371_v30, %s758_s18  ;;  %v499_v30 = vld [vmem:[%s832_s8] sm:$0x1] }
 0x198   : > { %v348_v31 = vpop.permute.xlu1 %347 }
 0x199   : > { %v350_v32 = vsub.f32 %v344_v27, %v348_v31 }
 0x19b   : > { %v377_v33 = vadd.f32 1e-05, %v350_v32 }
 0x19d   : > { %711 = vrsqrt.f32 %v377_v33  ;;  %vm384_vm7 = vweird.f32 %v377_v33 }
 0x1a3   : > { %v712_v34 = vpop.eup %711 }
 0x1a4   : > { %v379_v35 = vmul.f32 %v712_v34, %v377_v33  ;;  %vm385_vm6 = vweird.f32 %v712_v34 }
 0x1a5   : > { %vm386_vm8 = vmor %vm384_vm7, %vm385_vm6 }
 0x1a6   : > { %v380_v36 = vmul.f32 %v712_v34, %v379_v35 }
 0x1a8   : > { %v381_v37 = vmul.f32 0.5, %v380_v36 }
 0x1aa   : > { %v382_v38 = vsub.f32 1.5, %v381_v37 }
 0x1ac   : > { %v383_v39 = vmul.f32 %v712_v34, %v382_v38 }
 0x1ae   : > { %v387_v40 = vsel %vm386_vm8, %v712_v34, %v383_v39 }
 0x1af   : > { %v389_v41 = vrot.slane %v387_v40, 4 }
 0x1b1   : > { %390 = vrot.lane.b32.xlu2 %v389_v41, %s755_s30 }
 0x1ed   : > { %v374_v43 = vpop.permute.xlu2 %373 }
 0x1ee   : > { %v376_v44 = vsub.f32 %v870_v23, %v374_v43 }
 0x1f0   : > { %415 = vperm.xlu1 %701, %v376_v44  }
 0x1f8   : > { %704 = vset.pattern.permute.xlu1 %v760_v56 }
 0x20b   : > { %v391_v45 = vpop.permute.xlu2 %390 }
 0x20c   : > { %v393_v46 = vmul.f32 %v391_v45, %v870_v23 }
 0x20e   : > { %v395_v47 = vrot.slane %v393_v46, 4 }
 0x210   : > { %396 = vrot.lane.b32.xlu2 %v395_v47, %s757_s17 }
 0x218   : > { %420 = vperm.xlu2 %702, %v393_v46  }
 0x220   : > { %705 = vset.pattern.permute.xlu2 %v761_v57 }
 0x221   : > { %469 = vperm.xlu2 %705, %v870_v23  }
 0x229   : > { %707 = vset.pattern.permute.xlu2 %v763_v59 }
 0x22a   : > { %488 = vperm.xlu2 %707, %v870_v23  }
 0x262   : > { %v416_v51 = vpop.permute.xlu1 %415 }
 0x263   : > { %v418_v52 = vadd.f32 %v416_v51, %v412_v50 }
 0x265   : > { %645 = vmatpush.msk.msra.mxu0 %vm444_vm9, %v418_v52 }
 0x266   : > { %646 = vmatmul.msk.f32.vlgmr.msra.gmra.mxu0 %vm441_vm10, %v870_v23 }
 0x26a   : > { %v397_v53 = vpop.permute.xlu2 %396 }
 0x26b   : > { %v399_v54 = vmul.f32 %v397_v53, %v344_v27 }
 0x26d   : > { %v401_v55 = vrot.slane %v399_v54, 4 }
 0x26f   : > { %402 = vrot.lane.b32.xlu1 %v401_v55, %s758_s18 }
 0x272   : > { %v421_v62 = vpop.permute.xlu2 %420 }
 0x273   : > { %v422_v63 = vperm.slane %v421_v62, 4 }
 0x275   : > { %v424_v2 = vmul.f32 %v422_v63, %v407_v0 }
 0x277   : > { %434 = vperm.xlu1 %704, %v870_v23  }
 0x27b   : > { %v470_v9 = vpop.permute.xlu2 %469 }
 0x27f   : > { %706 = vset.pattern.permute.xlu1 %v762_v58 }
 0x280   : > { %475 = vperm.xlu1 %706, %v870_v23  }
 0x284   : > { %v489_v21 = vpop.permute.xlu2 %488 }
 0x2e1   : > { %v403_v60 = vpop.permute.xlu1 %402 }
 0x2e2   : > { %v405_v61 = vsub.f32 %v870_v23, %v403_v60 }
 0x2e3   : > { %v465_v7 = vpop.f32.mrf.mxu0 }
 0x2e4   : > { %427 = vperm.xlu0 %703, %v405_v61  }
 0x2e9   : > { %v435_v4 = vpop.permute.xlu1 %434 }
 0x2ec   : > { %708 = vset.pattern.permute.xlu0 %v763_v59 }
 0x2f2   : > { %v476_v12 = vpop.permute.xlu1 %475 }
 0x356   : > { %v428_v1 = vpop.permute.xlu0 %427 }
 0x357   : > { %v429_v3 = vperm.slane %v428_v1, 4 }
 0x359   : > { %v431_v5 = vadd.f32 %v429_v3, %v424_v2 }
 0x35b   : > { %v438_v6 = vperm.slane %v431_v5, 0 }
 0x35d   : > { %v440_v8 = vmul.f32 %v438_v6, %v435_v4 }
 0x35f   : > { %v466_v10 = vadd.f32 %v465_v7, %v440_v8 }
 0x361   : > { %v472_v11 = vadd.f32 %v470_v9, %v466_v10 }
 0x363   : > { %v473_v13 = vmax.f32 %v472_v11, 0.0 }
 0x365   : > { %v478_v14 = vmul.f32 %v476_v12, %v473_v13 }
 0x367   : > { %v480_v15 = vsel %vm479_vm11, %v478_v14, 0.0 }
 0x368   : > { %v481_v16 = vrot.slane %v480_v15, 4 }
 0x36a   : > { %v482_v17 = vadd.f32 %v481_v16, %v480_v15 }
 0x36c   : > { %v483_v18 = vrot.slane %v482_v17, 2 }
 0x36e   : > { %v484_v19 = vadd.f32 %v483_v18, %v482_v17 }
 0x370   : > { %v485_v20 = vrot.slane %v484_v19, 1 }
 0x372   : > { %v486_v22 = vadd.f32 %v485_v20, %v484_v19 }
 0x374   : > { %v491_v23 = vadd.f32 %v489_v21, %v486_v22 }
 0x376   : > { %v492_v25 = vpack.c.bf16 %v491_v23, %v491_v23  ;;  %v501_v26 = vsel %vm493_vm12, %v491_v23, 0.0  ;;  %v508_v27 = vmul.f32 %v491_v23, %v491_v23 }
 0x377   : > { %502 = vadd.xlane.f32.xlu0 %v501_v26 }
 0x378   : > { %v497_v28 = vsel %vm495_vm14, %v492_v25, %v496_v24  ;;  %v509_v29 = vsel %vm493_vm12, %v508_v27, 0.0 }
 0x379   : > { %498 = vst [vmem:[%s850_s19] sm:$0x1] %v497_v28  ;;  %510 = vadd.xlane.f32.xlu1 %v509_v29 }
 0x3ea   : > { %v503_v31 = vpop.xlane.xlu0 %502 }
 0x3eb   : > { %v504_v32 = vadd.f32 %v503_v31, %v499_v30 }
 0x3ec   : > { %v511_v33 = vpop.xlane.xlu1 %510 }
 0x3ed   : > { %506 = vst.msk [vmem:[%s832_s8] sm:$0x1] %vm505_vm15, %v504_v32 }
 0x3f4   : > { %v507_v34 = vld [vmem:[%s832_s8] sm:$0x1] }
 0x3f5   : > { %v512_v35 = vadd.f32 %v511_v33, %v507_v34 }
 0x3f7   : > { %514 = vst.msk [vmem:[%s832_s8] sm:$0x1] %vm513_vm0, %v512_v35 }
 0x3f8 PF: > { %s17_s25 = sadd.s32 1, %s751_s25   ;;  %s921_s21 = smov %s743_s23 }
 0x3f9   : > { %p14_p8 = scmp.ge.s32.totalorder %s17_s25, 6   ;;  %s922_s22 = smov %s747_s24 }
 0x3fa   : > { %s923_s23 = smov %s926_s26  ;;  %s924_s24 = smov %s930_s27 }
 0x3fb   :  { %16 = sbr.rel (!%p14_p8) target bundleno = 3 (0x3), region = 89 }

// kernel: guide_flow_forward.7
= control target key start
LH: loop header
LB: loop body
LE: loop exit
PB: predicated region body
PF: predicated region fallthrough
CT: control target
= control target key end

     0   :  { %s639_s18 = smov 0   ;;  %s641_s19 = smov 0   ;;  %s717_s0 = inlined_call_operand.vmem [shape: f32[2,4,256], index: 0, kind: input, shape index: {}]   ;;  %s718_s1 = inlined_call_operand.vmem [shape: bf16[2,1,256], index: 1, kind: input, shape index: {}]   ;;  %s719_s2 = inlined_call_operand.vmem [shape: f32[2,1,2], index: 2, kind: input, shape index: {}]   ;;  %s720_s3 = inlined_call_operand.vmem [shape: f32[4,5], index: 3, kind: input, shape index: {}]   ;;  %s721_s4 = inlined_call_operand.vmem [shape: f32[1,2], index: 4, kind: input, shape index: {}]   ;;  %s722_s5 = inlined_call_operand.vmem [shape: f32[2,4,256], index: 5, kind: output, shape index: {}]  }
   0x1   :  { %s643_s20 = smov 0   ;;  %s645_s21 = smov 0  }
   0x2   :  { %s647_s22 = smov 0  }
   0x3 LB: > { %s24_s23 = sadd.s32 1, %s594_s20  ;;  %s27_s24 = sadd.s32 1, %s598_s21  ;;  %s602_s22 = sphi %s647_s22, %s15_s22   ;;  %s598_s21 = sphi %s645_s21, %s726_s21   ;;  %s594_s20 = sphi %s643_s20, %s725_s20   ;;  %s590_s19 = sphi %s641_s19, %s724_s19   ;;  %s586_s18 = sphi %s639_s18, %s723_s18  }
   0x4   : > { %p25_p0 = scmp.ge.s32.totalorder %s24_s23, 2  ;;  %p498_p1 = scmp.ge.s32.totalorder %s602_s22, 1 }
   0x5   : > { %p220_p2 = scmp.lt.s32.totalorder %s602_s22, 5 }
   0x6   : > { %s728_s23 = smov (%p25_p0, %s24_s23), 0  ;;  %s730_s24 = smov (!%p25_p0, %s27_s24), %s598_s21 }
   0x7   : > { %p221_p3 = pnand %p498_p1, %p220_p2  ;;  %p29_p4 = scmp.ge.s32.totalorder %s730_s24, 2 }
   0x8   : > { %s604_s29 = smov (!%p221_p3), 1   ;;  %s606_s30 = smov (!%p221_p3), 127  }
   0x9   : > { %s732_s24 = smov (%p29_p4, %s730_s24), 0  ;;  %224 = sbr.rel (%p221_p3) target bundleno = 561 (0x231), region = 40 }
   0xa   : > { %p261_p5 = scmp.lt.s32.totalorder (!%p221_p3), %s590_s19, 1  ;;  %p263_p6 = scmp.lt.s32.totalorder (!%p221_p3), %s586_s18, 1 }
   0xe   : > { %v284_v0 = vld [vmem:[%s719_s2] sm:$0x1]  ;;  %v285_v1 = vld [vmem:[%s719_s2 + $0x1] sm:$0x1]  ;;  %vm286_vm0 = vcmask 8192   ;;  %v605_v7 = vmov 0  }
   0xf   : > { %v287_v2 = vsel %vm286_vm0, %v284_v0, 0.0  ;;  %v288_v3 = vsel %vm286_vm0, %v285_v1, 0.0  ;;  %554 = vset.pattern.permute.xlu1 %v605_v7  ;;  %v298_v18 = vld [vmem:[%s721_s4] sm:$0x1]  ;;  %v607_v19 = vmov 1   ;;  %s734_s19 = smov (!%p261_p5, %s590_s19), 1 }
  0x10   : > { %v289_v4 = vadd.f32 %v288_v3, %v287_v2  ;;  %555 = vset.pattern.permute.xlu2 %v607_v19  ;;  %s736_s18 = smov (!%p263_p6, %s586_s18), 1  ;;  %s499_s8 = sshll.u32 %s734_s19, 1  ;;  %v297_v33 = vld [vmem:[%s720_s3] sm:$0xf]  ;;  %v608_v34 = vmov 4   ;;  %vm368_vm8 = vcmask 1043456  }
  0x11   : > { %332 = vperm.xlu2 %555, %v298_v18   ;;  %s686_s9 = sadd.s32 %s499_s8, %s736_s18  ;;  %557 = vset.pattern.permute.xlu0 %v608_v34  ;;  %vm365_vm9 = vcmask 31744  }
  0x12   : > { %v290_v5 = vmul.f32 0.001953125, %v289_v4  ;;  %s275_s12 = scalar_lea.vmem %s718_s1, %s686_s9  ;;  %s500_s15 = sshll.u32 %s686_s9, 2 }
  0x13   : > { %v299_v23 = vld [vmem:[%s275_s12] sm:$0x1]  ;;  %s268_s18 = scalar_lea.vmem %s717_s0, %s500_s15  ;;  %s283_s26 = scalar_lea.vmem %s722_s5, %s500_s15 }
  0x14   : > { %v291_v6 = vmul.f32 %v290_v5, %v290_v5  ;;  %303 = vperm.xlu1 %554, %v290_v5   ;;  %v300_v24 = vunpack.c.l.bf16 %v299_v23  ;;  %v356_v48 = vld [vmem:[%s268_s18] sm:$0xf] }
  0x16   : > { %293 = vrot.lane.b32.xlu0 %v291_v6, %s604_s29 }
  0x19   : > { %556 = vset.pattern.permute.xlu2 %v608_v34 }
  0x1a   : > { %362 = vperm.xlu2 %556, %v297_v33  }
  0x6b   : > { %v333_v25 = vpop.permute.xlu2 %332 }
  0x6c   : > { %v335_v29 = vperm.slane %v333_v25, 0 }
  0x74   : > { %v363_v51 = vpop.permute.xlu2 %362 }
  0x86   : > { %v304_v22 = vpop.permute.xlu1 %303 }
  0x87   : > { %v306_v27 = vsub.f32 %v300_v24, %v304_v22 }
  0x88   : > { %v294_v8 = vpop.permute.xlu0 %293 }
  0x89   : > { %v296_v9 = vsub.f32 %v290_v5, %v294_v8 }
  0x8b   : > { %v307_v10 = vadd.f32 1e-05, %v296_v9 }
  0x8d   : > { %558 = vrsqrt.f32 %v307_v10  ;;  %vm314_vm2 = vweird.f32 %v307_v10 }
  0x93   : > { %v559_v11 = vpop.eup %558 }
  0x94   : > { %v309_v12 = vmul.f32 %v559_v11, %v307_v10  ;;  %vm315_vm1 = vweird.f32 %v559_v11 }
  0x95   : > { %vm316_vm3 = vmor %vm314_vm2, %vm315_vm1 }
  0x96   : > { %v310_v13 = vmul.f32 %v559_v11, %v309_v12 }
  0x98   : > { %v311_v14 = vmul.f32 0.5, %v310_v13 }
  0x9a   : > { %v312_v15 = vsub.f32 1.5, %v311_v14 }
  0x9c   : > { %v313_v16 = vmul.f32 %v559_v11, %v312_v15 }
  0x9e   : > { %v317_v17 = vsel %vm316_vm3, %v559_v11, %v313_v16 }
  0x9f   : > { %319 = vrot.lane.b32.xlu0 %v317_v17, %s606_s30 }
 0x111   : > { %v320_v20 = vpop.permute.xlu0 %319 }
 0x112   : > { %v322_v21 = vmul.f32 %v320_v20, %v298_v18 }
 0x114   : > { %325 = vperm.xlu1 %554, %v322_v21  }
 0x186   : > { %v326_v26 = vpop.permute.xlu1 %325 }
 0x187   : > { %v328_v28 = vperm.slane %v326_v26, 0 }
 0x189   : > { %v329_v30 = vmul.f32 %v328_v28, %v306_v27 }
 0x18b   : > { %v336_v31 = vadd.f32 %v335_v29, %v329_v30 }
 0x18d   : > { %v504_v32 = vmul.f32 -1.442695, %v336_v31 }
 0x18f   : > { %560 = vpow2.f32 %v504_v32 }
 0x195   : > { %v561_v35 = vpop.eup %560 }
 0x196   : > { %v340_v36 = vadd.f32 1.0, %v561_v35 }
 0x198   : > { %562 = vrcp.f32 %v340_v36  ;;  %v352_v40 = vand.u32 2147483648, %v340_v36  ;;  %v350_v42 = vand.u32 2147483647, %v340_v36  ;;  %vm346_vm5 = vweird.f32 %v340_v36 }
 0x19a   : > { %v353_v44 = vor.u32 1.1754944e-38, %v352_v40  ;;  %vm351_vm7 = vcmp.eq.f32.partialorder %v350_v42, 8.507059e+37 }
 0x19e   : > { %v563_v37 = vpop.eup %562 }
 0x19f   : > { %v342_v38 = vmul.f32 %v563_v37, %v340_v36  ;;  %vm347_vm4 = vweird.f32 %v563_v37 }
 0x1a0   : > { %vm348_vm6 = vmor %vm346_vm5, %vm347_vm4 }
 0x1a1   : > { %v343_v39 = vsub.f32 1.0, %v342_v38 }
 0x1a3   : > { %v344_v41 = vmul.f32 %v563_v37, %v343_v39 }
 0x1a5   : > { %v345_v43 = vadd.f32 %v563_v37, %v344_v41 }
 0x1a7   : > { %v349_v45 = vsel %vm348_vm6, %v563_v37, %v345_v43 }
 0x1a8   : > { %v354_v46 = vsel %vm351_vm7, %v353_v44, %v349_v45 }
 0x1a9   : > { %v357_v47 = vadd.f32 1.0, %v354_v46 }
 0x1ab   : > { %v358_v49 = vperm.slane %v357_v47, 0 }
 0x1ad   : > { %v359_v50 = vmul.f32 %v358_v49, %v356_v48 }
 0x1af   : > { %505 = vmatpush.msk.msra.mxu0 %vm368_vm8, %v359_v50 }
 0x1b0   : > { %506 = vmatmul.msk.f32.vlgmr.msra.gmra.mxu0 %vm365_vm9, %v297_v33 }
 0x22d   : > { %v389_v52 = vpop.f32.mrf.mxu0 }
 0x22e   : > { %v390_v53 = vadd.f32 %v389_v52, %v363_v51 }
 0x230   : > { %392 = vst [vmem:[%s283_s26] sm:$0xf] %v390_v53 }
 0x231 PF: > { %s15_s22 = sadd.s32 1, %s602_s22   ;;  %s723_s18 = smov %s594_s20 }
 0x232   : > { %p12_p7 = scmp.ge.s32.totalorder %s15_s22, 6   ;;  %s724_s19 = smov %s598_s21 }
 0x233   : > { %s725_s20 = smov %s728_s23  ;;  %s726_s21 = smov %s732_s24 }
 0x234   :  { %14 = sbr.rel (!%p12_p7) target bundleno = 3 (0x3), region = 73 }

</bundles_post_ra>
